<compile_context>
chip_gen: v5e
topology: v5e:2x2
jax: 0.10.0
libtpu: 0.0.40
codegen_flags: <defaults>
</compile_context>

<pallas_src>
import functools
import numpy as np
import jax
import jax.numpy as jnp
from jax.experimental import pallas as pl
from jax.experimental.pallas import tpu as pltpu

_HAS_RECIP = hasattr(pl, "reciprocal")
_LADDER = (8, 16, 32, 64, 128, 256, 512)


# ----------------------------------------------------------------------------
# generation-aware config + single-buffer probe
# ----------------------------------------------------------------------------
def _round_up(x, m):
    return ((x + m - 1) // m) * m


def _gen_config():
    """Tile cap + vmem limit: 512/96MiB on 128-MiB-VMEM parts (v5e/v6e), 256/44MiB else."""
    cap, vmem = 256, 44 * 1024 * 1024
    try:
        info = pltpu.get_tpu_info()
        vbytes = getattr(info, "vmem_capacity_bytes", None)
        if vbytes is not None and vbytes >= 100 * 1024 * 1024:
            cap, vmem = 512, 96 * 1024 * 1024
    except Exception:
        pass
    return cap, vmem


_CAP, _VMEM_LIMIT = _gen_config()


def _probe_single_buffer():
    """Check that pipeline_mode=pl.Buffered(1) lowers and runs; fall back otherwise."""
    if not hasattr(pl, "Buffered"):
        return False
    try:
        x = jnp.arange(16 * 128, dtype=jnp.float32).reshape(16, 128)
        w = jnp.ones((8, 128), jnp.float32)

        def kern(x_ref, w_ref, o_ref):
            o_ref[...] = x_ref[...] + w_ref[...]

        out = pl.pallas_call(
            kern,
            out_shape=jax.ShapeDtypeStruct((16, 128), jnp.float32),
            grid=(2,),
            in_specs=[pl.BlockSpec((8, 128), lambda i: (i, 0)),
                      pl.BlockSpec((8, 128), lambda i: (0, 0),
                                   pipeline_mode=pl.Buffered(1))],
            out_specs=pl.BlockSpec((8, 128), lambda i: (i, 0)),
        )(x, w)
        out = jax.block_until_ready(out)
        return bool(jnp.allclose(out, x + 1.0))
    except Exception:
        return False


_SINGLE_BUF = _probe_single_buffer()


def _const_spec(shape):
    """BlockSpec for a block that never changes across the grid (weights / biases):
    constant index map, single-buffered when the runtime supports it."""
    n = len(shape)
    idx = lambda *args: (0,) * n
    if _SINGLE_BUF:
        return pl.BlockSpec(shape, idx, pipeline_mode=pl.Buffered(1))
    return pl.BlockSpec(shape, idx)


def _cparams(dims):
    return pltpu.CompilerParams(dimension_semantics=dims,
                                vmem_limit_bytes=_VMEM_LIMIT)


def _tile_for(m, cap):
    """(tile, padded_m): ladder tile <= cap giving >=2 grid blocks whenever possible."""
    m8 = _round_up(max(int(m), 1), 8)
    target = max(8, m8 // 2)
    tile = 8
    for t in _LADDER:
        if t <= cap and t <= target:
            tile = t
    return tile, _round_up(m8, tile)


def _kernel_tile(mp, cap):
    """Largest ladder tile <= cap dividing the (already padded) extent with >=2 blocks."""
    best = None
    for t in _LADDER:
        if t <= cap and mp % t == 0 and mp // t >= 2:
            best = t
    return best if best is not None else mp


# ----------------------------------------------------------------------------
# small in-kernel helpers
# ----------------------------------------------------------------------------
def _mm(a, b):
    """bf16 MXU matmul with f32 accumulation."""
    return jnp.dot(a.astype(jnp.bfloat16), b.astype(jnp.bfloat16),
                   preferred_element_type=jnp.float32)


def _mm_t(a, b):
    """a:(m,k) x b:(n,k) -> (m,n) contracting last dims (no explicit transpose)."""
    return jax.lax.dot_general(a.astype(jnp.bfloat16), b.astype(jnp.bfloat16),
                               (((1,), (1,)), ((), ())),
                               preferred_element_type=jnp.float32)


def _recip(x):
    if _HAS_RECIP:
        return pl.reciprocal(x, approx=True)
    return 1.0 / x


def _layer_norm(z, gamma, beta, eps):
    mu = jnp.mean(z, axis=-1, keepdims=True)
    var = jnp.mean(jnp.square(z - mu), axis=-1, keepdims=True)
    return (z - mu) * jax.lax.rsqrt(var + eps) * gamma + beta


# ----------------------------------------------------------------------------
# Pallas kernels
# ----------------------------------------------------------------------------
def _ffn_kernel(x_ref, w1_ref, b1_ref, w2_ref, b2_ref, o_ref):
    h = jnp.maximum(_mm(x_ref[...], w1_ref[...]) + b1_ref[...], 0.0)
    o_ref[...] = _mm(h, w2_ref[...]) + b2_ref[...]


def ffn(x, p):
    """Fw: Linear -> ReLU -> Linear fused; hidden activation never leaves VMEM."""
    M, K = x.shape
    F = p["w1"].shape[1]
    Nout = p["w2"].shape[1]
    tm = _kernel_tile(M, _CAP)
    return pl.pallas_call(
        _ffn_kernel,
        out_shape=jax.ShapeDtypeStruct((M, Nout), jnp.float32),
        grid=(M // tm,),
        in_specs=[pl.BlockSpec((tm, K), lambda i: (i, 0)),
                  _const_spec((K, F)), _const_spec((1, F)),
                  _const_spec((F, Nout)), _const_spec((1, Nout))],
        out_specs=pl.BlockSpec((tm, Nout), lambda i: (i, 0)),
        compiler_params=_cparams(("parallel",)),
    )(x, p["w1"], p["b1"], p["w2"], p["b2"])


def _ffn_add_ln_kernel(x_ref, w1_ref, b1_ref, w2_ref, b2_ref, g_ref, be_ref,
                       y_ref, ln_ref, *, eps):
    x = x_ref[...]
    h = jnp.maximum(_mm(x, w1_ref[...]) + b1_ref[...], 0.0)
    y = _mm(h, w2_ref[...]) + b2_ref[...]
    y_ref[...] = y                                  # Fw(x)         (== ln1_out / atom_trans)
    ln_ref[...] = _layer_norm(x + y, g_ref[...], be_ref[...], eps)  # An(x, Fw(x))


def ffn_add_ln(x, p, gamma, beta, eps=1e-5):
    """Returns (Fw(x), LayerNorm(x + Fw(x))) — fw1 + an2 of EncodersAttn in one kernel."""
    M, D = x.shape
    F = p["w1"].shape[1]
    tm = _kernel_tile(M, _CAP)
    return pl.pallas_call(
        functools.partial(_ffn_add_ln_kernel, eps=eps),
        out_shape=(jax.ShapeDtypeStruct((M, D), jnp.float32),
                   jax.ShapeDtypeStruct((M, D), jnp.float32)),
        grid=(M // tm,),
        in_specs=[pl.BlockSpec((tm, D), lambda i: (i, 0)),
                  _const_spec((D, F)), _const_spec((1, F)),
                  _const_spec((F, D)), _const_spec((1, D)),
                  _const_spec((1, D)), _const_spec((1, D))],
        out_specs=(pl.BlockSpec((tm, D), lambda i: (i, 0)),
                   pl.BlockSpec((tm, D), lambda i: (i, 0))),
        compiler_params=_cparams(("parallel",)),
    )(x, p["w1"], p["b1"], p["w2"], p["b2"], gamma, beta)


def _mha_flash_kernel(xq_ref, xkv_ref, wq_ref, bq_ref, wkv_ref, bkv_ref,
                      wo_ref, bo_ref, g_ref, be_ref, o_ref,
                      q_sc, acc_sc, m_sc, l_sc,
                      *, num_heads, d_model, n_valid, n_kv_pad, tk, eps):
    """Self-attention (batch=1) with fused Q/K/V projection, flash KV tiling,
    post-PV normalisation, single out-projection matmul, residual + LayerNorm."""
    k_idx = pl.program_id(1)
    dh = d_model // num_heads

    @pl.when(k_idx == 0)
    def _init():
        acc_sc[...] = jnp.zeros_like(acc_sc)
        m_sc[...] = jnp.full_like(m_sc, -jnp.inf)
        l_sc[...] = jnp.zeros_like(l_sc)
        q = _mm(xq_ref[...], wq_ref[...]) + bq_ref[...]     # 1/sqrt(dh) folded into wq/bq
        for h in range(num_heads):
            q_sc[h] = q[:, h * dh:(h + 1) * dh]

    # K/V projected per KV tile inside the loop -> no (N,3D) HBM intermediate.
    kv = _mm(xkv_ref[...], wkv_ref[...]) + bkv_ref[...]     # (tk, 2D) f32

    mask_needed = (n_kv_pad != n_valid)
    if mask_needed:
        kv_rows = k_idx * tk + jax.lax.broadcasted_iota(jnp.int32, (1, tk), 1)
        kv_valid = kv_rows < n_valid

    for h in range(num_heads):                              # static head loop
        k_h = kv[:, h * dh:(h + 1) * dh]
        v_h = kv[:, d_model + h * dh:d_model + (h + 1) * dh]
        s = _mm_t(q_sc[h], k_h)                             # (tq, tk), scale pre-folded
        if mask_needed:
            s = jnp.where(kv_valid, s, -1e30)
        m_prev = m_sc[h]
        m_new = jnp.maximum(m_prev, jnp.max(s, axis=-1, keepdims=True))
        p = jnp.exp(s - m_new)
        if mask_needed:
            p = jnp.where(kv_valid, p, 0.0)
        alpha = jnp.exp(m_prev - m_new)
        l_sc[h] = alpha * l_sc[h] + jnp.sum(p, axis=-1, keepdims=True)
        acc_sc[h] = alpha * acc_sc[h] + _mm(p, v_h)
        m_sc[h] = m_new

    @pl.when(k_idx == pl.num_programs(1) - 1)
    def _finalize():
        # normalise AFTER the PV matmul (per-head (tq,dh) multiply, not (tq,N)),
        # concat heads, one (tq,D)@(D,D) out-projection.
        o = jnp.concatenate(
            [acc_sc[h] * _recip(l_sc[h]) for h in range(num_heads)], axis=1)
        attn_out = _mm(o, wo_ref[...]) + bo_ref[...]
        z = xq_ref[...] + attn_out                          # residual = attention input
        o_ref[...] = _layer_norm(z, g_ref[...], be_ref[...], eps)


def attention_block(x, mp, gamma, beta, heads, n_valid, eps=1e-5):
    """MultiheadAttention(x,x,x) + out-proj + residual + LayerNorm, flash-tiled over KV.
    `x` is passed twice: the two specs window different (query / KV) tiles of it."""
    Np, D = x.shape
    tq = tk = _kernel_tile(Np, _CAP)
    dh = D // heads
    kern = functools.partial(_mha_flash_kernel, num_heads=heads, d_model=D,
                             n_valid=n_valid, n_kv_pad=Np, tk=tk, eps=eps)
    return pl.pallas_call(
        kern,
        out_shape=jax.ShapeDtypeStruct((Np, D), jnp.float32),
        grid=(Np // tq, Np // tk),
        in_specs=[pl.BlockSpec((tq, D), lambda i, k: (i, 0)),   # query tile of x
                  pl.BlockSpec((tk, D), lambda i, k: (k, 0)),   # KV tile of x
                  _const_spec((D, D)), _const_spec((1, D)),
                  _const_spec((D, 2 * D)), _const_spec((1, 2 * D)),
                  _const_spec((D, D)), _const_spec((1, D)),
                  _const_spec((1, D)), _const_spec((1, D))],
        out_specs=pl.BlockSpec((tq, D), lambda i, k: (i, 0)),
        scratch_shapes=[pltpu.VMEM((heads, tq, dh), jnp.float32),   # q per head
                        pltpu.VMEM((heads, tq, dh), jnp.float32),   # acc per head
                        pltpu.VMEM((heads, tq, 1), jnp.float32),    # running max
                        pltpu.VMEM((heads, tq, 1), jnp.float32)],   # running sum
        compiler_params=_cparams(("parallel", "arbitrary")),
    )(x, x, mp["wq"], mp["bq"], mp["wkv"], mp["bkv"],
      mp["wo"], mp["bo"], gamma, beta)


def _group_max_sum_kernel(x_ref, o_ref):
    x = x_ref[...]                       # (S, tf, K, D)
    S, _, K, _ = x.shape
    acc = None
    for s in range(S):                   # static: sum over centroid sets
        m = x[s, :, 0, :]
        for j in range(1, K):            # static: max over neighbors
            m = jnp.maximum(m, x[s, :, j, :])
        acc = m if acc is None else acc + m
    o_ref[...] = acc


def group_max_sum(gathered):
    """(S, Nfp, K, D) -> sum over sets of (max over neighbors) -> (Nfp, D)."""
    S, Nfp, K, D = gathered.shape
    tf = _kernel_tile(Nfp, _CAP)
    return pl.pallas_call(
        _group_max_sum_kernel,
        out_shape=jax.ShapeDtypeStruct((Nfp, D), jnp.float32),
        grid=(Nfp // tf,),
        in_specs=[pl.BlockSpec((S, tf, K, D), lambda i: (0, i, 0, 0))],
        out_specs=pl.BlockSpec((tf, D), lambda i: (i, 0)),
        compiler_params=_cparams(("parallel",)),
    )(gathered)


def gather_group_max_sum(feats, cent_idx_p):
    # TODO(synk): scalar-prefetched cent_idx + in-kernel DMA row gather would avoid
    # materialising the (S, Nfp, K, D) gathered tensor in HBM.
    S, Nfp, K = cent_idx_p.shape
    D = feats.shape[1]
    gathered = jnp.take(feats, cent_idx_p.reshape(-1), axis=0).reshape(S, Nfp, K, D)
    return group_max_sum(gathered)


def _tnet_points_kernel(x_ref, w1_ref, b1_ref, w2_ref, b2_ref, w3_ref, b3_ref,
                        o_ref, gmax_ref, *, tn, n_valid, n_pad):
    i = pl.program_id(0)

    @pl.when(i == 0)
    def _init():
        gmax_ref[...] = jnp.zeros_like(gmax_ref)     # ReLU outputs are >= 0

    h = jnp.maximum(_mm(x_ref[...], w1_ref[...]) + b1_ref[...], 0.0)
    h = jnp.maximum(_mm(h, w2_ref[...]) + b2_ref[...], 0.0)
    h = jnp.maximum(_mm(h, w3_ref[...]) + b3_ref[...], 0.0)        # (tn, 1024)
    if n_pad != n_valid:                                           # mask padded points
        rows = i * tn + jax.lax.broadcasted_iota(jnp.int32, (tn, 1), 0)
        h = jnp.where(rows < n_valid, h, 0.0)
    gmax_ref[...] = jnp.maximum(gmax_ref[...], jnp.max(h, axis=0, keepdims=True))

    @pl.when(i == pl.num_programs(0) - 1)
    def _final():
        o_ref[...] = gmax_ref[...]


def _tnet_head_kernel(g_ref, f1w_ref, f1b_ref, f2w_ref, f2b_ref, f3w_ref, f3b_ref,
                      o_ref):
    g = jnp.maximum(_mm(g_ref[...], f1w_ref[...]) + f1b_ref[...], 0.0)
    g = jnp.maximum(_mm(g, f2w_ref[...]) + f2b_ref[...], 0.0)
    o_ref[...] = _mm(g, f3w_ref[...]) + f3b_ref[...]               # (1, 9)


def tnet3(xyz_p, p, n_valid):
    """TNetin(k=3): tiled point-MLP + running global max (kernel 1), FC head (kernel 2).
    Splitting keeps the big FC weights out of the per-tile VMEM working set."""
    Np = xyz_p.shape[0]
    tn = _kernel_tile(Np, min(_CAP, 128))
    gmax = pl.pallas_call(
        functools.partial(_tnet_points_kernel, tn=tn, n_valid=n_valid, n_pad=Np),
        out_shape=jax.ShapeDtypeStruct((1, 1024), jnp.float32),
        grid=(Np // tn,),
        in_specs=[pl.BlockSpec((tn, 3), lambda i: (i, 0)),
                  _const_spec((3, 64)), _const_spec((1, 64)),
                  _const_spec((64, 128)), _const_spec((1, 128)),
                  _const_spec((128, 1024)), _const_spec((1, 1024))],
        out_specs=pl.BlockSpec((1, 1024), lambda i: (0, 0)),
        scratch_shapes=[pltpu.VMEM((1, 1024), jnp.float32)],
        compiler_params=_cparams(("arbitrary",)),
    )(xyz_p, p["c1_w"], p["c1_b"], p["c2_w"], p["c2_b"], p["c3_w"], p["c3_b"])
    return pl.pallas_call(
        _tnet_head_kernel,
        out_shape=jax.ShapeDtypeStruct((1, 9), jnp.float32),
        grid=(1,),
        in_specs=[_const_spec((1, 1024)),
                  _const_spec((1024, 512)), _const_spec((1, 512)),
                  _const_spec((512, 256)), _const_spec((1, 256)),
                  _const_spec((256, 9)), _const_spec((1, 9))],
        out_specs=pl.BlockSpec((1, 9), lambda i: (0, 0)),
        compiler_params=_cparams(("arbitrary",)),
    )(gmax, p["fc1_w"], p["fc1_b"], p["fc2_w"], p["fc2_b"], p["fc3_w"], p["fc3_b"])


def _xform_ff_kernel(x_ref, t_ref, e_ref, w1_ref, b1_ref, w2_ref, b2_ref, o_ref):
    t1 = _mm(x_ref[...], t_ref[...]) + e_ref[...]
    h = jnp.maximum(_mm(t1, w1_ref[...]) + b1_ref[...], 0.0)
    o_ref[...] = _mm(h, w2_ref[...]) + b2_ref[...]


def xform_embed_ff(xyz_p, T, em, p):
    """Input_ly_atom tail: (xyz @ T + embedding) -> Fw, fused and tiled over N."""
    Np = xyz_p.shape[0]
    Dm = p["w1"].shape[1]
    Do = p["w2"].shape[1]
    tm = _kernel_tile(Np, _CAP)
    return pl.pallas_call(
        _xform_ff_kernel,
        out_shape=jax.ShapeDtypeStruct((Np, Do), jnp.float32),
        grid=(Np // tm,),
        in_specs=[pl.BlockSpec((tm, 3), lambda i: (i, 0)),
                  _const_spec((3, 3)),
                  pl.BlockSpec((tm, 3), lambda i: (i, 0)),
                  _const_spec((3, Dm)), _const_spec((1, Dm)),
                  _const_spec((Dm, Do)), _const_spec((1, Do))],
        out_specs=pl.BlockSpec((tm, Do), lambda i: (i, 0)),
        compiler_params=_cparams(("parallel",)),
    )(xyz_p, T, em, p["w1"], p["b1"], p["w2"], p["b2"])


def _decoder_kernel(x_ref, w1_ref, b1_ref, w2_ref, b2_ref, o_ref, *, tl, L):
    """Two k=3 / pad=1 convs; each conv is ONE matmul on a lane-concatenated
    (rows, 3C) tensor (weights prepacked to (3C, Cout)).  The input is a
    resident halo-padded slab (real rows live at [2, 2+L))."""
    j = pl.program_id(0)
    base = pl.multiple_of(j * tl, 8)
    xs = x_ref[pl.ds(base, tl + 4), :]                        # ext rows [base, base+tl+4)
    x3 = jnp.concatenate([xs[0:tl + 2], xs[1:tl + 3], xs[2:tl + 4]], axis=1)
    h = jnp.maximum(_mm(x3, w1_ref[...]) + b1_ref[...], 0.0)  # h at ext rows [base+1, base+tl+3)
    hrows = base + 1 + jax.lax.broadcasted_iota(jnp.int32, (tl + 2, 1), 0)
    h = jnp.where((hrows >= 2) & (hrows < 2 + L), h, 0.0)     # conv2 zero-padding boundary
    h3 = jnp.concatenate([h[0:tl], h[1:tl + 1], h[2:tl + 2]], axis=1)
    o_ref[...] = _mm(h3, w2_ref[...]) + b2_ref[...]           # (tl, 128) lane-padded


def decoder_convs(x, p):
    """Decoders.dv1 (conv3-BN-ReLU-conv3), tiled over L."""
    # TODO(synk): for very long chains stream the halo slab per tile via manual DMA
    # instead of keeping the full (Lext, C) input resident.
    L, C = x.shape
    tl, Lp = _tile_for(L, _CAP)
    Lext = Lp + 8
    Cm = p["c1_w"].shape[1]
    x_ext = jnp.zeros((Lext, C), jnp.float32).at[2:2 + L, :].set(x)
    out = pl.pallas_call(
        functools.partial(_decoder_kernel, tl=tl, L=L),
        out_shape=jax.ShapeDtypeStruct((Lp, 128), jnp.float32),
        grid=(Lp // tl,),
        in_specs=[_const_spec((Lext, C)),
                  _const_spec((3 * C, Cm)), _const_spec((1, Cm)),
                  _const_spec((3 * Cm, 128)), _const_spec((1, 128))],
        out_specs=pl.BlockSpec((tl, 128), lambda j: (j, 0)),
        compiler_params=_cparams(("parallel",)),
    )(x_ext, p["c1_w"], p["c1_b"], p["c2_w"], p["c2_b"])
    return out[:L, :1]


# ----------------------------------------------------------------------------
# Module forward passes built on the kernels (glue = gathers / pads / adds)
# ----------------------------------------------------------------------------
def input_ly_atom(xyz_p, atom_idx_p, p, n_atom):             # Input_ly_atom
    g9 = tnet3(xyz_p, p["tnet"], n_valid=n_atom)             # (1, 9)
    T = (g9 + jnp.eye(3, dtype=jnp.float32).reshape(1, 9)).reshape(3, 3)
    # TODO(synk): embedding lookup is a data-dependent gather; done in XLA glue.
    em = p["em_atom"][atom_idx_p]                            # (Np, 3)
    return xform_embed_ff(xyz_p, T, em, p["fw1"])


def input_ly_fasta(out_atom, cent_idx_p, fasta_idx_p, p):    # Input_ly_fasta
    fasta_em = p["em_fasta"][fasta_idx_p]                    # (Nfp, fasta_em_dim)
    acc = gather_group_max_sum(out_atom, cent_idx_p)         # (Nfp, em_dim)
    out_cat = jnp.concatenate([fasta_em, acc], axis=1)
    return ffn(out_cat, p["fw"])


def encoders_attn(x, p, heads, n_valid):                     # EncodersAttn
    a1 = attention_block(x, p["attn"], p["an1_g"], p["an1_b"], heads, n_valid)
    # fw1_out == PyTorch ln1_out (pre-LN FFN output); an2_out == attn_ly_out2.
    fw1_out, an2_out = ffn_add_ln(a1, p["fw1"], p["an2_g"], p["an2_b"])
    ln2_out = ffn(an2_out, p["fw2"])
    return fw1_out, ln2_out


def align_former(out_atom, out_fasta, rep_idx_p, cent_idx_p, p, heads,
                 n_atom, n_fasta):                           # AlignFormer
    align_fasta = jnp.take(out_fasta, rep_idx_p, axis=0)     # AlignCount.aligns
    atom_in = out_atom + align_fasta
    atom_trans, atom_out = encoders_attn(atom_in, p["enc"], heads, n_atom)
    acc = gather_group_max_sum(atom_trans, cent_idx_p)
    fasta_q = out_fasta + acc
    f = attention_block(fasta_q, p["cross"], p["an_g"], p["an_b"], heads, n_fasta)
    f = ffn(f, p["lrl"])
    return atom_out, f


def decoders(out_atom, out_fasta, rep_idx, p, n_atom):       # Decoders
    x = out_atom[:n_atom] + jnp.take(out_fasta, rep_idx, axis=0)   # (L, C)
    return decoder_convs(x, p)                               # (L, 1)


def pbstnet_forward(params, xyz, atom_index, grouped_xyz_index, fasta_index,
                    my_dict, heads):
    """PbstNet.forward.  xyz:(1,N,3)  atom_index:(1,N)  grouped_xyz_index: list of
    (1,Nf,k)  fasta_index:(1,Nf)  my_dict: python list of per-residue atom counts."""
    xyz2 = xyz[0].astype(jnp.float32)
    atom_idx = atom_index[0]
    fasta_idx = fasta_index[0]
    cent_idx = jnp.stack([c[0] for c in grouped_xyz_index], axis=0)   # (S, Nf, K)
    N = xyz2.shape[0]
    Nf = fasta_idx.shape[0]

    _, Np = _tile_for(N, _CAP)
    _, Nfp = _tile_for(Nf, _CAP)

    # token-axis padding; padded rows are masked in attention / T-Net max and
    # sliced off before the decoder / at the end.
    xyz_p = jnp.zeros((Np, 3), jnp.float32).at[:N].set(xyz2)
    atom_idx_p = jnp.zeros((Np,), atom_idx.dtype).at[:N].set(atom_idx)
    fasta_idx_p = jnp.zeros((Nfp,), fasta_idx.dtype).at[:Nf].set(fasta_idx)
    S, _, K = cent_idx.shape
    cent_idx_p = jnp.zeros((S, Nfp, K), cent_idx.dtype).at[:, :Nf, :].set(cent_idx)

    rep = np.repeat(np.arange(len(my_dict)), np.asarray(my_dict)).astype(np.int32)
    rep_idx = jnp.asarray(rep)                               # (N,)
    rep_idx_p = jnp.zeros((Np,), jnp.int32).at[:N].set(rep_idx)

    out_atom = input_ly_atom(xyz_p, atom_idx_p, params["in_atom"], n_atom=N)
    out_fasta = input_ly_fasta(out_atom, cent_idx_p, fasta_idx_p, params["in_fasta"])
    for lp in params["layers"]:
        out_atom, out_fasta = align_former(out_atom, out_fasta, rep_idx_p, cent_idx_p,
                                           lp, heads, n_atom=N, n_fasta=Nf)
    return decoders(out_atom, out_fasta, rep_idx, params["dec"], n_atom=N)


# ----------------------------------------------------------------------------
# Deterministic synthetic parameter construction (weights pre-cast to bf16,
# BatchNorm folded at running stats mean=0 / var=1, attention scale folded into wq/bq,
# decoder conv weights prepacked to (3*Cin, Cout) with the final conv lane-padded).
# ----------------------------------------------------------------------------
class ParamGen:
    def __init__(self, seed):
        self._key = jax.random.PRNGKey(seed)
        self._n = 0

    def normal(self, shape, scale=0.1):
        self._n += 1
        k = jax.random.fold_in(self._key, self._n)
        return (scale * jax.random.normal(k, shape)).astype(jnp.float32)


def _w(x):
    return x.astype(jnp.bfloat16)


def make_conv_bn(pg, fin, fout):
    w, b = pg.normal((fin, fout)), pg.normal((fout,))
    gamma = jnp.ones((fout,), jnp.float32) + pg.normal((fout,), 0.05)
    beta = pg.normal((fout,), 0.05)
    s = gamma * jax.lax.rsqrt(jnp.ones((fout,), jnp.float32) + 1e-5)
    return _w(w * s[None, :]), (b * s + beta).reshape(1, fout)


def make_fw(pg, fin, fout, fmid):
    return {"w1": _w(pg.normal((fin, fmid))), "b1": pg.normal((1, fmid)),
            "w2": _w(pg.normal((fmid, fout))), "b2": pg.normal((1, fout))}


def make_mha(pg, D, heads):
    dh = D // heads
    scale = 1.0 / float(np.sqrt(dh))
    wq = pg.normal((D, D)) * scale                 # 1/sqrt(dh) folded in
    bq = pg.normal((1, D)) * scale
    return {"wq": _w(wq), "bq": bq,
            "wkv": _w(pg.normal((D, 2 * D))), "bkv": pg.normal((1, 2 * D)),
            "wo": _w(pg.normal((D, D))), "bo": pg.normal((1, D))}


def make_ln(pg, D):
    return (jnp.ones((1, D), jnp.float32) + pg.normal((1, D), 0.05),
            pg.normal((1, D), 0.05))


def make_tnet(pg):
    c1w, c1b = make_conv_bn(pg, 3, 64)
    c2w, c2b = make_conv_bn(pg, 64, 128)
    c3w, c3b = make_conv_bn(pg, 128, 1024)
    return {"c1_w": c1w, "c1_b": c1b, "c2_w": c2w, "c2_b": c2b,
            "c3_w": c3w, "c3_b": c3b,
            "fc1_w": _w(pg.normal((1024, 512))), "fc1_b": pg.normal((1, 512)),
            "fc2_w": _w(pg.normal((512, 256))), "fc2_b": pg.normal((1, 256)),
            "fc3_w": _w(pg.normal((256, 9), 0.01)), "fc3_b": pg.normal((1, 9), 0.01)}


def make_encoders_attn(pg, din, dout, heads):
    g1, b1 = make_ln(pg, din)
    g2, b2 = make_ln(pg, din)
    return {"attn": make_mha(pg, din, heads),
            "an1_g": g1, "an1_b": b1,
            "fw1": make_fw(pg, din, din, din * 2),
            "an2_g": g2, "an2_b": b2,
            "fw2": make_fw(pg, din, dout, (dout + din) // 2)}


def make_alignformer(pg, din, dout, heads):
    g, b = make_ln(pg, din)
    return {"enc": make_encoders_attn(pg, din, dout, heads),
            "cross": make_mha(pg, din, heads),
            "an_g": g, "an_b": b,
            "lrl": make_fw(pg, din, dout, (dout + din) // 2)}


def make_decoder(pg, em):
    cm = em // 2
    w1 = pg.normal((3, em, cm))                  # per-tap (k, Cin, Cout)
    b1 = pg.normal((cm,))
    gamma = jnp.ones((cm,), jnp.float32) + pg.normal((cm,), 0.05)
    beta = pg.normal((cm,), 0.05)
    s = gamma * jax.lax.rsqrt(jnp.ones((cm,), jnp.float32) + 1e-5)
    w1 = w1 * s[None, None, :]
    b1 = b1 * s + beta
    w1p = w1.reshape(3 * em, cm)                 # taps stacked along Cin: one matmul/conv
    w2 = pg.normal((3, cm, 1))
    b2 = pg.normal((1,))
    # lane-pad the final conv to 128 output columns (unmasked stores), slice in glue
    w2p = jnp.zeros((3 * cm, 128), jnp.float32).at[:, :1].set(w2.reshape(3 * cm, 1))
    b2p = jnp.zeros((128,), jnp.float32).at[:1].set(b2)
    return {"c1_w": _w(w1p), "c1_b": b1.reshape(1, cm),
            "c2_w": _w(w2p), "c2_b": b2p.reshape(1, 128)}


def make_params(em_dim, fasta_em_dim, heads, attn_layers, seed=42):
    pg = ParamGen(seed)
    params = {
        "in_atom": {"tnet": make_tnet(pg),
                    "em_atom": pg.normal((5, 3)),
                    "fw1": make_fw(pg, 3, em_dim, em_dim * 2)},
        "in_fasta": {"em_fasta": pg.normal((21, fasta_em_dim)),
                     "fw": make_fw(pg, fasta_em_dim + em_dim, em_dim, em_dim * 2)},
        "layers": [],
    }
    sta = 1
    for i in range(attn_layers):
        if i < attn_layers / 2:
            din, dout = em_dim * sta, em_dim * sta * 2
            sta *= 2
        else:
            din, dout = em_dim * sta, em_dim * sta // 2
            sta //= 2
        params["layers"].append(make_alignformer(pg, din, dout, heads))
    params["dec"] = make_decoder(pg, em_dim)
    return params


# ----------------------------------------------------------------------------
if __name__ == "__main__":
    em_dim, fasta_em_dim, heads, attn_layers = 32, 16, 2, 2
    N_atom, N_fasta, k_nb = 20, 10, 4        # non-multiple-of-tile: exercises padding+masks

    key = jax.random.PRNGKey(0)
    k1, k2, k3, k4 = jax.random.split(key, 4)
    xyz = jax.random.normal(k1, (1, N_atom, 3), dtype=jnp.float32)
    atom_index = jax.random.randint(k2, (1, N_atom), 0, 5)
    fasta_index = jax.random.randint(k3, (1, N_fasta), 0, 21)
    grouped_xyz_index = [jax.random.randint(k4, (1, N_fasta, k_nb), 0, N_atom)]
    my_dict = [2] * N_fasta                   # per-residue atom counts, sums to N_atom

    params = make_params(em_dim, fasta_em_dim, heads, attn_layers, seed=42)

    out = pbstnet_forward(params, xyz, atom_index, grouped_xyz_index,
                          fasta_index, my_dict, heads)
    out = jax.block_until_ready(out)
    assert out.shape == (N_atom, 1), out.shape
    assert bool(jnp.all(jnp.isfinite(out)))
    print("KERNEL_OK")
</pallas_src>

<mosaic_0001>
module attributes {stable_mosaic.version = 11 : i64} {
  func.func @kern(%arg0: i32, %arg1: memref<8x128xf32, #tpu.memory_space<vmem>>, %arg2: memref<8x128xf32, #tpu.memory_space<vmem>>, %arg3: memref<8x128xf32, #tpu.memory_space<vmem>>) attributes {dimension_semantics = [#tpu.dimension_semantics<arbitrary>], iteration_bounds = array<i64: 2>, scalar_prefetch = 0 : i64, scratch_operands = 0 : i64, tpu.core_type = #tpu.core_type<tc>, window_params = [{transform_indices = @transform_0, window_bounds = array<i64: 8, 128>}, {pipeline_mode = #tpu.pipeline_mode<synchronous>, transform_indices = @transform_1, window_bounds = array<i64: 8, 128>}, {transform_indices = @transform_2, window_bounds = array<i64: 8, 128>}]} {
    %c0 = arith.constant 0 : index
    %c0_0 = arith.constant 0 : index
    %0 = vector.load %arg1[%c0, %c0_0] : memref<8x128xf32, #tpu.memory_space<vmem>>, vector<8x128xf32>
    %c0_1 = arith.constant 0 : index
    %c0_2 = arith.constant 0 : index
    %1 = vector.load %arg2[%c0_1, %c0_2] : memref<8x128xf32, #tpu.memory_space<vmem>>, vector<8x128xf32>
    %2 = arith.addf %0, %1 : vector<8x128xf32>
    %c0_3 = arith.constant 0 : index
    %c0_4 = arith.constant 0 : index
    %3 = vector.load %arg3[%c0_3, %c0_4] : memref<8x128xf32, #tpu.memory_space<vmem>>, vector<8x128xf32>
    tpu.vector_store %arg3[%c0_3, %c0_4], %2 {strides = array<i32>} : memref<8x128xf32, #tpu.memory_space<vmem>>, vector<8x128xf32>,
    return
  }
  func.func @transform_0(%arg0: i32) -> (i32, i32) {
    %c0_i32 = arith.constant 0 : i32
    %c0_i32_0 = arith.constant 0 : i32
    return %arg0, %c0_i32 : i32, i32
  }
  func.func @transform_1(%arg0: i32) -> (i32, i32) {
    %c0_i32 = arith.constant 0 : i32
    %c0_i32_0 = arith.constant 0 : i32
    %c0_i32_1 = arith.constant 0 : i32
    return %c0_i32, %c0_i32_0 : i32, i32
  }
  func.func @transform_2(%arg0: i32) -> (i32, i32) {
    %c0_i32 = arith.constant 0 : i32
    %c0_i32_0 = arith.constant 0 : i32
    return %arg0, %c0_i32 : i32, i32
  }
}

module attributes {stable_mosaic.version = 11 : i64} {
  func.func @_tnet_points_kernel(%arg0: i32, %arg1: memref<8x3xf32, #tpu.memory_space<vmem>>, %arg2: memref<3x64xbf16, #tpu.memory_space<vmem>>, %arg3: memref<1x64xf32, #tpu.memory_space<vmem>>, %arg4: memref<64x128xbf16, #tpu.memory_space<vmem>>, %arg5: memref<1x128xf32, #tpu.memory_space<vmem>>, %arg6: memref<128x1024xbf16, #tpu.memory_space<vmem>>, %arg7: memref<1x1024xf32, #tpu.memory_space<vmem>>, %arg8: memref<1x1024xf32, #tpu.memory_space<vmem>>, %arg9: memref<1x1024xf32, #tpu.memory_space<vmem>>) attributes {dimension_semantics = [#tpu.dimension_semantics<arbitrary>], iteration_bounds = array<i64: 3>, scalar_prefetch = 0 : i64, scratch_operands = 1 : i64, tpu.core_type = #tpu.core_type<tc>, window_params = [{transform_indices = @transform_0, window_bounds = array<i64: 8, 3>}, {pipeline_mode = #tpu.pipeline_mode<synchronous>, transform_indices = @transform_1, window_bounds = array<i64: 3, 64>}, {pipeline_mode = #tpu.pipeline_mode<synchronous>, transform_indices = @transform_2, window_bounds = array<i64: 1, 64>}, {pipeline_mode = #tpu.pipeline_mode<synchronous>, transform_indices = @transform_3, window_bounds = array<i64: 64, 128>}, {pipeline_mode = #tpu.pipeline_mode<synchronous>, transform_indices = @transform_4, window_bounds = array<i64: 1, 128>}, {pipeline_mode = #tpu.pipeline_mode<synchronous>, transform_indices = @transform_5, window_bounds = array<i64: 128, 1024>}, {pipeline_mode = #tpu.pipeline_mode<synchronous>, transform_indices = @transform_6, window_bounds = array<i64: 1, 1024>}, {pipeline_mode = #tpu.pipeline_mode<synchronous>, transform_indices = @transform_7, window_bounds = array<i64: 1, 1024>}]} {
    %c0_i32 = arith.constant 0 : i32
    %0 = arith.cmpi eq, %arg0, %c0_i32 : i32
    %1 = arith.extui %0 : i1 to i32
    %c0_i32_0 = arith.constant 0 : i32
    %2 = arith.cmpi ne, %1, %c0_i32_0 : i32
    scf.if %2 {
      %cst_26 = arith.constant 0.000000e+00 : f32
      %46 = vector.broadcast %cst_26 : f32 to vector<1x1024xf32>
      %c0_27 = arith.constant 0 : index
      %c0_28 = arith.constant 0 : index
      %47 = vector.load %arg9[%c0_27, %c0_28] : memref<1x1024xf32, #tpu.memory_space<vmem>>, vector<1x1024xf32>
      tpu.vector_store %arg9[%c0_27, %c0_28], %46 {strides = array<i32>} : memref<1x1024xf32, #tpu.memory_space<vmem>>, vector<1x1024xf32>,
    } else {
    }
    %c0 = arith.constant 0 : index
    %c0_1 = arith.constant 0 : index
    %3 = vector.load %arg1[%c0, %c0_1] : memref<8x3xf32, #tpu.memory_space<vmem>>, vector<8x3xf32>
    %c0_2 = arith.constant 0 : index
    %c0_3 = arith.constant 0 : index
    %4 = vector.load %arg2[%c0_2, %c0_3] : memref<3x64xbf16, #tpu.memory_space<vmem>>, vector<3x64xbf16>
    %5 = arith.truncf %3 : vector<8x3xf32> to vector<8x3xbf16>
    %cst = arith.constant dense<0.000000e+00> : vector<8x64xf32>
    %6 = tpu.matmul %5, %4, %cst {dimension_numbers = #tpu.dot_dimension_numbers<[1], [0], [0], [1], [0, 0, 1, 1], [], []>} : vector<8x3xbf16>, vector<3x64xbf16>, vector<8x64xf32> -> vector<8x64xf32>
    %c0_4 = arith.constant 0 : index
    %c0_5 = arith.constant 0 : index
    %7 = vector.load %arg3[%c0_4, %c0_5] : memref<1x64xf32, #tpu.memory_space<vmem>>, vector<1x64xf32>
    %8 = vector.broadcast %7 : vector<1x64xf32> to vector<8x64xf32>
    %9 = arith.addf %6, %8 : vector<8x64xf32>
    %cst_6 = arith.constant 0.000000e+00 : f32
    %10 = vector.broadcast %cst_6 : f32 to vector<8x64xf32>
    %11 = arith.maximumf %9, %10 : vector<8x64xf32>
    %c0_7 = arith.constant 0 : index
    %c0_8 = arith.constant 0 : index
    %12 = vector.load %arg4[%c0_7, %c0_8] : memref<64x128xbf16, #tpu.memory_space<vmem>>, vector<64x128xbf16>
    %13 = arith.truncf %11 : vector<8x64xf32> to vector<8x64xbf16>
    %cst_9 = arith.constant dense<0.000000e+00> : vector<8x128xf32>
    %14 = tpu.matmul %13, %12, %cst_9 {dimension_numbers = #tpu.dot_dimension_numbers<[1], [0], [0], [1], [0, 0, 1, 1], [], []>} : vector<8x64xbf16>, vector<64x128xbf16>, vector<8x128xf32> -> vector<8x128xf32>
    %c0_10 = arith.constant 0 : index
    %c0_11 = arith.constant 0 : index
    %15 = vector.load %arg5[%c0_10, %c0_11] : memref<1x128xf32, #tpu.memory_space<vmem>>, vector<1x128xf32>
    %16 = vector.broadcast %15 : vector<1x128xf32> to vector<8x128xf32>
    %17 = arith.addf %14, %16 : vector<8x128xf32>
    %cst_12 = arith.constant 0.000000e+00 : f32
    %18 = vector.broadcast %cst_12 : f32 to vector<8x128xf32>
    %19 = arith.maximumf %17, %18 : vector<8x128xf32>
    %c0_13 = arith.constant 0 : index
    %c0_14 = arith.constant 0 : index
    %20 = vector.load %arg6[%c0_13, %c0_14] : memref<128x1024xbf16, #tpu.memory_space<vmem>>, vector<128x1024xbf16>
    %21 = arith.truncf %19 : vector<8x128xf32> to vector<8x128xbf16>
    %cst_15 = arith.constant dense<0.000000e+00> : vector<8x1024xf32>
    %22 = tpu.matmul %21, %20, %cst_15 {dimension_numbers = #tpu.dot_dimension_numbers<[1], [0], [0], [1], [0, 0, 1, 1], [], []>} : vector<8x128xbf16>, vector<128x1024xbf16>, vector<8x1024xf32> -> vector<8x1024xf32>
    %c0_16 = arith.constant 0 : index
    %c0_17 = arith.constant 0 : index
    %23 = vector.load %arg7[%c0_16, %c0_17] : memref<1x1024xf32, #tpu.memory_space<vmem>>, vector<1x1024xf32>
    %24 = vector.broadcast %23 : vector<1x1024xf32> to vector<8x1024xf32>
    %25 = arith.addf %22, %24 : vector<8x1024xf32>
    %cst_18 = arith.constant 0.000000e+00 : f32
    %26 = vector.broadcast %cst_18 : f32 to vector<8x1024xf32>
    %27 = arith.maximumf %25, %26 : vector<8x1024xf32>
    %c8_i32 = arith.constant 8 : i32
    %28 = arith.muli %arg0, %c8_i32 : i32
    %29 = tpu.iota {dimensions = array<i32: 0>} : vector<8x1xi32>
    %30 = vector.broadcast %28 : i32 to vector<8x1xi32>
    %31 = arith.addi %30, %29 : vector<8x1xi32>
    %c20_i32 = arith.constant 20 : i32
    %32 = vector.broadcast %c20_i32 : i32 to vector<8x1xi32>
    %33 = arith.cmpi slt, %31, %32 : vector<8x1xi32>
    %cst_19 = arith.constant 0.000000e+00 : f32
    %34 = vector.shape_cast %33 : vector<8x1xi1> to vector<8x1xi1>
    %35 = vector.broadcast %34 : vector<8x1xi1> to vector<8x1024xi1>
    %36 = vector.broadcast %cst_19 : f32 to vector<8x1024xf32>
    %37 = arith.select %35, %27, %36 : vector<8x1024xi1>, vector<8x1024xf32>
    %c0_20 = arith.constant 0 : index
    %c0_21 = arith.constant 0 : index
    %38 = vector.load %arg9[%c0_20, %c0_21] : memref<1x1024xf32, #tpu.memory_space<vmem>>, vector<1x1024xf32>
    %cst_22 = arith.constant dense<0xFF800000> : vector<1024xf32>
    %39 = vector.multi_reduction <maximumf>, %37, %cst_22 [0] : vector<8x1024xf32> to vector<1024xf32>
    %40 = vector.shape_cast %39 : vector<1024xf32> to vector<1x1024xf32>
    %41 = arith.maximumf %38, %40 : vector<1x1024xf32>
    %c0_23 = arith.constant 0 : index
    %c0_24 = arith.constant 0 : index
    %42 = vector.load %arg9[%c0_23, %c0_24] : memref<1x1024xf32, #tpu.memory_space<vmem>>, vector<1x1024xf32>
    tpu.vector_store %arg9[%c0_23, %c0_24], %41 {strides = array<i32>} : memref<1x1024xf32, #tpu.memory_space<vmem>>, vector<1x1024xf32>,
    %c2_i32 = arith.constant 2 : i32
    %43 = arith.cmpi eq, %arg0, %c2_i32 : i32
    %44 = arith.extui %43 : i1 to i32
    %c0_i32_25 = arith.constant 0 : i32
    %45 = arith.cmpi ne, %44, %c0_i32_25 : i32
    scf.if %45 {
      %c0_26 = arith.constant 0 : index
      %c0_27 = arith.constant 0 : index
      %46 = vector.load %arg9[%c0_26, %c0_27] : memref<1x1024xf32, #tpu.memory_space<vmem>>, vector<1x1024xf32>
      %c0_28 = arith.constant 0 : index
      %c0_29 = arith.constant 0 : index
      %47 = vector.load %arg8[%c0_28, %c0_29] : memref<1x1024xf32, #tpu.memory_space<vmem>>, vector<1x1024xf32>
      tpu.vector_store %arg8[%c0_28, %c0_29], %46 {strides = array<i32>} : memref<1x1024xf32, #tpu.memory_space<vmem>>, vector<1x1024xf32>,
    } else {
    }
    return
  }
  func.func @transform_0(%arg0: i32) -> (i32, i32) {
    %c0_i32 = arith.constant 0 : i32
    %c0_i32_0 = arith.constant 0 : i32
    return %arg0, %c0_i32 : i32, i32
  }
  func.func @transform_1(%arg0: i32) -> (i32, i32) {
    %c0_i32 = arith.constant 0 : i32
    %c0_i32_0 = arith.constant 0 : i32
    %c0_i32_1 = arith.constant 0 : i32
    return %c0_i32, %c0_i32_0 : i32, i32
  }
  func.func @transform_2(%arg0: i32) -> (i32, i32) {
    %c0_i32 = arith.constant 0 : i32
    %c0_i32_0 = arith.constant 0 : i32
    %c0_i32_1 = arith.constant 0 : i32
    return %c0_i32, %c0_i32_0 : i32, i32
  }
  func.func @transform_3(%arg0: i32) -> (i32, i32) {
    %c0_i32 = arith.constant 0 : i32
    %c0_i32_0 = arith.constant 0 : i32
    %c0_i32_1 = arith.constant 0 : i32
    return %c0_i32, %c0_i32_0 : i32, i32
  }
  func.func @transform_4(%arg0: i32) -> (i32, i32) {
    %c0_i32 = arith.constant 0 : i32
    %c0_i32_0 = arith.constant 0 : i32
    %c0_i32_1 = arith.constant 0 : i32
    return %c0_i32, %c0_i32_0 : i32, i32
  }
  func.func @transform_5(%arg0: i32) -> (i32, i32) {
    %c0_i32 = arith.constant 0 : i32
    %c0_i32_0 = arith.constant 0 : i32
    %c0_i32_1 = arith.constant 0 : i32
    return %c0_i32, %c0_i32_0 : i32, i32
  }
  func.func @transform_6(%arg0: i32) -> (i32, i32) {
    %c0_i32 = arith.constant 0 : i32
    %c0_i32_0 = arith.constant 0 : i32
    %c0_i32_1 = arith.constant 0 : i32
    return %c0_i32, %c0_i32_0 : i32, i32
  }
  func.func @transform_7(%arg0: i32) -> (i32, i32) {
    %c0_i32 = arith.constant 0 : i32
    %c0_i32_0 = arith.constant 0 : i32
    %c0_i32_1 = arith.constant 0 : i32
    return %c0_i32, %c0_i32_0 : i32, i32
  }
}

</mosaic_0001>

<bundles_post_ra>
// kernel: tpu_custom_call.1
= control target key start
LH: loop header
LB: loop body
LE: loop exit
PB: predicated region body
PF: predicated region fallthrough
CT: control target
= control target key end

     0   :  { %7 = vsyncpa [#allocation3], 0  ;;  %s633_s0 = inlined_call_operand.hbm [shape: f32[16,128], index: 0, kind: input, shape index: {}]   ;;  %s634_s1 = inlined_call_operand.hbm [shape: f32[8,128], index: 1, kind: input, shape index: {}]   ;;  %s635_s2 = inlined_call_operand.hbm [shape: f32[16,128], index: 2, kind: output, shape index: {}]  }
   0x1   :  { %9 = vsyncpa [#allocation3 + $0x1], 0 }
   0x2   :  { %10 = vsyncpa [#allocation6], 0 }
   0x3   :  { %11 = vsyncpa [#allocation4], 0 }
   0x4   :  { %13 = vsyncpa [#allocation4 + $0x1], 0  ;;  %s495_s9 = smov 0   ;;  %s497_s10 = smov 0  }
   0x5   :  { %s499_s11 = smov 0   ;;  %s501_s12 = smov 0  }
   0x6 LB: > { %s516_s13 = sadd.s32 4294967295, %s477_s12   ;;  %s276_s14 = sadd.s32 4294967294, %s477_s12   ;;  %s477_s12 = sphi %s501_s12, %s645_s12   ;;  %s473_s11 = sphi %s499_s11, %s644_s11   ;;  %s469_s10 = sphi %s497_s10, %s643_s10   ;;  %s465_s9 = sphi %s495_s9, %s642_s9  }
   0x7   : > { %p39_p0 = scmp.ne.s32.totalorder %s469_s10, %s465_s9  ;;  %p40_p1 = scmp.eq.s32.totalorder %s516_s13, 0 }
   0x8   : > { %p84_p2 = scmp.eq.s32.totalorder %s516_s13, 1  ;;  %p90_p3 = scmp.eq.s32.totalorder %s276_s14, 1 }
   0x9   : > { %p525_p4 = por %p40_p1, %p39_p0  ;;  %p277_p5 = scmp.ge.s32.totalorder %s477_s12, 1 }
   0xa   : > { %p530_p6 = por %p90_p3, %p39_p0  ;;  %p97_p7 = scmp.lt.s32.totalorder %s477_s12, 3 }
   0xb   : > { %s109_s19 = sshll.u32 %s634_s1, 4  ;;  %s479_s21 = smov [#allocation5]   ;;  %s110_s19 = int_to_ptr.hbm [resolvable:$true] %s109_s19 }
   0xc   : > { %p538_p8 = pnand %p277_p5, %p97_p7  ;;  %s111_s22 = sshll.u32 %s479_s21, 4  ;;  %s112_s22 = int_to_ptr.vmem [resolvable:$true] %s111_s22 }
   0xd   : > { %s548_s23 = sadd.s32 1, %s477_s12   ;;  %s26_s24 = sadd.s32 1, %s473_s11 }
   0xe   : > { %p298_p10 = pneg %p538_p8  ;;  %s23_s25 = ssub.s32 %s477_s12, %s548_s23 }
   0xf   : > { %p24_p12 = scmp.eq.s32.totalorder %s23_s25, 0  ;;  %p33_p13 = scmp.ne.s32.totalorder %s473_s11, %s469_s10 }
  0x10   : > { %p299_p11 = pnand %p298_p10, %p40_p1  ;;  %p34_p0 = scmp.eq.s32.totalorder %s477_s12, 0 }
  0x11   : > { %s557_s26 = scalar_select %p24_p12, %s473_s11, %s26_s24  }
  0x12   : > { %301 = dma.hbm_to_vmem [thread:$0]  (!%p299_p11), %s110_s19, 128, %s112_s22, [#allocation6]  }
  0x13   : > { %p561_p3 = por %p84_p2, %p33_p13  ;;  %p311_p5 = scmp.lt.s32.totalorder %s477_s12, 2 }
  0x14   : > { %s122_s28 = sand.u32 1, %s473_s11   ;;  %s281_s29 = sshll.u32 %s477_s12, 3 }
  0x15   : > { %p35_p7 = por %p34_p0, %p33_p13  ;;  %s280_s30 = sshll.u32 %s122_s28, 3 }
  0x16   : > { %s130_s5 = scalar_lea.hbm %s633_s0, %s281_s29  ;;  %s126_s7 = scalar_lea.vmem [#allocation2], %s280_s30 }
  0x17   : > { %s132_s6 = sshll.u32 %s130_s5, 4  ;;  %s134_s8 = sshll.u32 %s126_s7, 4  ;;  %s133_s6 = int_to_ptr.hbm [resolvable:$true] %s132_s6  ;;  %s135_s8 = int_to_ptr.vmem [resolvable:$true] %s134_s8 }
  0x18   : > { %p571_p10 = pnand %p311_p5, %p35_p7  ;;  %s123_s17 = scalar_lea.sflag [#allocation3], %s122_s28 }
  0x19   : > { %s377_s18 = sshra.s32 %s133_s6, 4  ;;  %s384_s24 = scalar_lea.hbm %s633_s0, 16  ;;  %s378_s18 = int_to_ptr.hbm [resolvable:$true] %s377_s18 }
  0x1a   : > { %s379_s19 = scalar_lea.hbm %s378_s18, 8  ;;  %p381_p11 = pneg %p571_p10 }
  0x1b   : > { %p380_p2 = scmp.ne.s32.totalorder %s378_s18, %s379_s19  ;;  %p385_p0 = scmp.lt.s32.totalorder %s378_s18, %s633_s0 }
  0x1c   : > { %p386_p5 = scmp.lt.s32.totalorder %s384_s24, %s379_s19 }
  0x1d   : > { %p382_p12 = pnand %p381_p11, %p380_p2 }
  0x1e   : > { %p387_p7 = por %p386_p5, %p385_p0 }
  0x1f   : > { %p383_p13 = pneg %p382_p12 }
  0x21   : > { %p388_p9 = pnand %p387_p7, %p383_p13 }
  0x23   : > { %391 = shalt.err (!%p388_p9)
}
  0x24   : > { %305 = dma.hbm_to_vmem [thread:$0]  (!%p571_p10), %s133_s6, 128, %s135_s8, %s123_s17  }
  0x25   : > { %143 = sbr.rel (%p538_p8) target bundleno = 60 (0x3c), region = 28  ;;  %s588_s28 = sand.u32 (!%p538_p8), 1, %s469_s10  }
  0x26   : > { %s283_s30 = sshll.u32 (!%p538_p8), %s588_s28, 3  ;;  %s146_s3 = scalar_lea.sflag (!%p538_p8), [#allocation3], %s588_s28 }
  0x27   : > { %s149_s4 = scalar_lea.vmem (!%p538_p8), [#allocation2], %s283_s30 }
  0x2a   : > { %452 = dma.done.wait (%p525_p4), %s146_s3, 128  }
  0x2b   : > { %454 = vsyncadd (%p525_p4), %s146_s3, 4294967168 }
  0x2c   : > { %456 = dma.done.wait (%p40_p1), [#allocation6], 128  }
  0x2d   : > { %458 = vsyncadd (%p40_p1), [#allocation6], 4294967168  ;;  %s287_s20 = sshll.u32 %s516_s13, 3  ;;  %s175_s8 = scalar_lea.vmem [#allocation7], %s283_s30  ;;  %v176_v0 = vld [vmem:[%s149_s4] sm:$0xff]  ;;  %v177_v1 = vld [vmem:[#allocation5] sm:$0xff] }
  0x2e   : > { %s191_s7 = scalar_lea.hbm %s635_s2, %s287_s20  ;;  %s193_s14 = sshll.u32 %s175_s8, 4  ;;  %v178_v2 = vadd.f32 %v177_v1, %v176_v0  ;;  %s194_s14 = int_to_ptr.vmem [resolvable:$true] %s193_s14 }
  0x2f   : > { %s195_s17 = sshll.u32 %s191_s7, 4  ;;  %s181_s15 = scalar_lea.sflag [#allocation4], %s588_s28  ;;  %s196_s17 = int_to_ptr.hbm [resolvable:$true] %s195_s17 }
  0x30   : > { %179 = vst [vmem:[%s175_s8] sm:$0xff] %v178_v2  ;;  %s421_s18 = sshra.s32 %s196_s17, 4  ;;  %s427_s22 = scalar_lea.hbm %s635_s2, 16  ;;  %s422_s18 = int_to_ptr.hbm [resolvable:$true] %s421_s18 }
  0x31   : > { %s423_s19 = scalar_lea.hbm %s422_s18, 8  ;;  %p428_p9 = scmp.lt.s32.totalorder %s422_s18, %s635_s2 }
  0x32   : > { %p424_p1 = scmp.ne.s32.totalorder %s422_s18, %s423_s19  ;;  %p429_p10 = scmp.lt.s32.totalorder %s427_s22, %s423_s19 }
  0x34   : > { %p425_p4 = pnand %p424_p1, %p561_p3  ;;  %p430_p2 = por %p429_p10, %p428_p9 }
  0x36   : > { %p426_p8 = pneg %p425_p4 }
  0x38   : > { %p431_p11 = pnand %p430_p2, %p426_p8 }
  0x3a   : > { %434 = shalt.err (!%p431_p11)
}
  0x3b   : > { %296 = dma.vmem_to_hbm [thread:$0]  (%p561_p3), %s194_s14, 128, %s196_s17, %s181_s15  }
  0x3c PF: > { %s207_s29 = sand.u32 1, %s465_s9   ;;  %p641_p12 = scmp.ge.s32.totalorder %s477_s12, 2 }
  0x3d   : > { %s208_s28 = scalar_lea.sflag [#allocation4], %s207_s29 }
  0x3e   : > { %p307_p13 = pnand %p641_p12, %p530_p6 }
  0x40   : > { %p308_p0 = pneg %p307_p13 }
  0x42   : > { %460 = dma.done.wait (%p308_p0), %s208_s28, 128  }
  0x43   : > { %462 = vsyncadd (%p308_p0), %s208_s28, 4294967168  ;;  %p16_p5 = scmp.ge.s32.totalorder %s548_s23, 4   ;;  %s642_s9 = smov %s469_s10 }
  0x44   : > { %s643_s10 = smov %s473_s11  ;;  %s644_s11 = smov %s557_s26 }
  0x45   : > { %s645_s12 = smov %s548_s23  ;;  %18 = sbr.rel (!%p16_p5) target bundleno = 6 (0x6), region = 77 }
  0x4a   :  { %214 = vsyncpa [#allocation3], 1 }
  0x4b   :  { %216 = vsyncpa [#allocation3 + $0x1], 1 }
  0x4c   :  { %217 = vsyncpa [#allocation6], 1 }
  0x4d   :  { %218 = vsyncpa [#allocation4], 1 }
  0x4e   :  { %220 = vsyncpa [#allocation4 + $0x1], 1 }

// kernel: tpu_custom_call.1
= control target key start
LH: loop header
LB: loop body
LE: loop exit
PB: predicated region body
PF: predicated region fallthrough
CT: control target
= control target key end

     0   :  { %12 = vsyncpa [#allocation4], 0  ;;  %s1722_s0 = inlined_call_operand.vmem [shape: f32[24,3], index: 0, kind: input, shape index: {}]   ;;  %s1723_s1 = inlined_call_operand.vmem [shape: bf16[3,64], index: 1, kind: input, shape index: {}]   ;;  %s1724_s2 = inlined_call_operand.vmem [shape: f32[1,64], index: 2, kind: input, shape index: {}]   ;;  %s1725_s3 = inlined_call_operand.hbm [shape: bf16[64,128], index: 3, kind: input, shape index: {}]   ;;  %s1726_s4 = inlined_call_operand.vmem [shape: f32[1,128], index: 4, kind: input, shape index: {}]   ;;  %s1727_s5 = inlined_call_operand.hbm [shape: bf16[128,1024], index: 5, kind: input, shape index: {}]   ;;  %s1728_s6 = inlined_call_operand.vmem [shape: f32[1,1024], index: 6, kind: input, shape index: {}]   ;;  %s1729_s7 = inlined_call_operand.hbm [shape: f32[1,1024], index: 7, kind: output, shape index: {}]  }
   0x1   :  { %13 = vsyncpa [#allocation7], 0 }
   0x2   :  { %14 = vsyncpa [#allocation5], 0  ;;  %s1634_s24 = smov 0  }
   0x3 LB: > { %s215_s27 = sshll.u32 %s1725_s3, 4  ;;  %s1643_s28 = sadd.s32 4294967295, %s1583_s24   ;;  %s1583_s24 = sphi %s1634_s24, %s20_s24   ;;  %s216_s27 = int_to_ptr.hbm [resolvable:$true] %s215_s27 }
   0x4   : > { %p1076_p0 = scmp.ge.s32.totalorder %s1583_s24, 1  ;;  %p198_p1 = scmp.lt.s32.totalorder %s1583_s24, 4 }
   0x5   : > { %p1077_p2 = scmp.ne.s32.totalorder %s1643_s28, 0  ;;  %p1452_p3 = scmp.eq.s32.totalorder %s1643_s28, 0 }
   0x6   : > { %p1649_p4 = pnand %p1076_p0, %p198_p1  ;;  %s1585_s30 = smov [#allocation3]  }
   0x7   : > { %s217_s8 = sshll.u32 %s1585_s30, 4  ;;  %s232_s11 = sshll.u32 %s1727_s5, 4  ;;  %s218_s8 = int_to_ptr.vmem [resolvable:$true] %s217_s8  ;;  %s233_s11 = int_to_ptr.hbm [resolvable:$true] %s232_s11 }
   0x8   : > { %p1445_p5 = pneg %p1649_p4  ;;  %s1586_s12 = smov [#allocation6]  }
   0x9   : > { %s234_s13 = sshll.u32 %s1586_s12, 4  ;;  %s1587_s14 = smov 64   ;;  %s235_s13 = int_to_ptr.vmem [resolvable:$true] %s234_s13 }
   0xa   : > { %p1446_p6 = pnand %p1452_p3, %p1445_p5  ;;  %s1588_s15 = smov 4  }
   0xb   : > { %s1589_s16 = smov 512   ;;  %s1590_s17 = smov 32  }
   0xc   : > { %1448 = dma.hbm_to_vmem [thread:$0]  (!%p1446_p6), %s216_s27, 512, %s218_s8, [#allocation4], %s1587_s14, %s1587_s14, %s1588_s15  }
   0xd   : > { %1451 = dma.hbm_to_vmem [thread:$0]  (!%p1446_p6), %s233_s11, 8192, %s235_s13, [#allocation7], %s1589_s16, %s1589_s16, %s1590_s17  }
   0xe   : > { %260 = sbr.rel (%p1649_p4) target bundleno = 488 (0x1e8), region = 48 }
  0x13   : > { %1570 = dma.done.wait (%p1452_p3), [#allocation4], 512  }
  0x14   : > { %1572 = vsyncadd (%p1452_p3), [#allocation4], 4294966784 }
  0x15   : > { %1574 = dma.done.wait (%p1452_p3), [#allocation7], 8192  }
  0x16   : > { %1576 = vsyncadd (%p1452_p3), [#allocation7], 4294959104  ;;  %p292_p7 = scmp.lt.s32.totalorder %s1643_s28, 2 }
  0x17   : > { %300 = sbr.rel (%p1077_p2) target bundleno = 30 (0x1e), region = 60 }
  0x18   : > { %s293_s18 = scalar_select %p292_p7, %s1643_s28, 2 }
  0x1a   : > { %s1083_s19 = sshll.u32 %s293_s18, 3 }
  0x1b   : > { %s295_s22 = scalar_lea.vmem %s1722_s0, %s1083_s19 }
  0x1c   : > { %v1591_v0 = vmov 0.0  }
  0x1d   : > { %301 = vst [vmem:[#allocation2] sm:$0xff] %v1591_v0 }
  0x1e PF: > { %v303_v1 = vld [vmem:[%s1723_s1] sm:$0x3]  ;;  %vm313_vm0 = vcmask 1040384   ;;  %vm314_vm1 = vcmask 1041408   ;;  %v1592_v2 = vmov 65535   ;;  %v1367_v8 = vld [vmem:[#allocation3 + $0x10] sm:$0xff] }
  0x1f   : > { %v315_v3 = vsel %vm313_vm0, 4294967295, %v1592_v2  ;;  %v302_v4 = vld [vmem:[%s295_s22] sm:$0xff]  ;;  %vm309_vm2 = vcmask 23552   ;;  %v1366_v10 = vld [vmem:[#allocation3 + $0x8] sm:$0xff]  ;;  %v1365_v11 = vld [vmem:[#allocation3] sm:$0xff]  ;;  %vm371_vm3 = vcmask 523264  }
  0x20   : > { %v1368_v5 = vld [vmem:[#allocation3 + $0x18] sm:$0xff]  ;;  %v316_v6 = vsel %vm314_vm1, %v315_v3, 0  ;;  %v304_v9 = vpack.c.bf16 %v302_v4, %v302_v4  ;;  %v1329_v12 = vld [vmem:[#allocation6 + $0x1c0] sm:$0xf]  ;;  %v1425_v14 = vld [vmem:[#allocation6 + $0x1c4] sm:$0xf] }
  0x21   : > { %v318_v7 = vand.u32 %v316_v6, %v303_v1  ;;  %379 = vmatpush.bf16.msra.mxu1 %v1368_v5  ;;  %v1429_v13 = vld [vmem:[#allocation6 + $0x1dc] sm:$0xf0]  ;;  %v1331_v16 = vld [vmem:[#allocation6 + $0x1e0] sm:$0xf0]  ;;  %v1337_v17 = vld [vmem:[#allocation6 + $0x1c8] sm:$0xf] }
  0x22   : > { %v1330_v15 = vor.u32 %v1429_v13, %v1329_v12  ;;  %v1430_v18 = vld [vmem:[#allocation6 + $0x1e4] sm:$0xf0]  ;;  %v1334_v19 = vor.u32 %v1425_v14, %v1331_v16  ;;  %v1426_v21 = vld [vmem:[#allocation6 + $0x1cc] sm:$0xf]  ;;  %v1297_v23 = vld [vmem:[#allocation6 + $0x180] sm:$0xf] }
  0x23   : > { %327 = vmatpush.bf16.msra.mxu0 %v318_v7  ;;  %v1338_v20 = vor.u32 %v1430_v18, %v1337_v17  ;;  %v1339_v22 = vld [vmem:[#allocation6 + $0x1e8] sm:$0xf0]  ;;  %v1421_v25 = vld [vmem:[#allocation6 + $0x19c] sm:$0xf0]  ;;  %v1417_v26 = vld [vmem:[#allocation6 + $0x184] sm:$0xf] }
  0x24   : > { %792 = vmatpush.bf16.msra.mxu2 %v1330_v15  ;;  %v1342_v24 = vor.u32 %v1426_v21, %v1339_v22  ;;  %v1299_v27 = vld [vmem:[#allocation6 + $0x1a0] sm:$0xf0]  ;;  %805 = vmatpush.bf16.msra.mxu3 %v1334_v19  ;;  %v1298_v28 = vor.u32 %v1421_v25, %v1297_v23  ;;  %v1305_v30 = vld [vmem:[#allocation6 + $0x188] sm:$0xf]  ;;  %v1418_v32 = vld [vmem:[#allocation6 + $0x18c] sm:$0xf] }
  0x25   : > { %380 = vmatpush.bf16.msra.mxu1 %v1367_v8  ;;  %v1302_v29 = vor.u32 %v1417_v26, %v1299_v27  ;;  %v1422_v31 = vld [vmem:[#allocation6 + $0x1a4] sm:$0xf0]  ;;  %v1307_v34 = vld [vmem:[#allocation6 + $0x1a8] sm:$0xf0]  ;;  %v1265_v35 = vld [vmem:[#allocation6 + $0x140] sm:$0xf] }
  0x26   : > { %1085 = vmatmul.msk.bf16.vlgmr.msra.gmra.mxu0 %vm309_vm2, %v304_v9  ;;  %v1306_v33 = vor.u32 %v1422_v31, %v1305_v30  ;;  %v1413_v36 = vld [vmem:[#allocation6 + $0x15c] sm:$0xf0]  ;;  %v1310_v37 = vor.u32 %v1418_v32, %v1307_v34  ;;  %v1409_v38 = vld [vmem:[#allocation6 + $0x144] sm:$0xf]  ;;  %v1273_v40 = vld [vmem:[#allocation6 + $0x148] sm:$0xf] }
  0x27   : > { %818 = vmatpush.bf16.msrb.mxu0 %v1338_v20  ;;  %v1267_v39 = vld [vmem:[#allocation6 + $0x160] sm:$0xf0]  ;;  %v1266_v41 = vor.u32 %v1413_v36, %v1265_v35  ;;  %v1414_v42 = vld [vmem:[#allocation6 + $0x164] sm:$0xf0]  ;;  %v1410_v43 = vld [vmem:[#allocation6 + $0x14c] sm:$0xf] }
  0x28   : > { %793 = vmatpush.bf16.msra.mxu2 %v1298_v28  ;;  %v1275_v44 = vld [vmem:[#allocation6 + $0x168] sm:$0xf0]  ;;  %806 = vmatpush.bf16.msra.mxu3 %v1302_v29  ;;  %v1270_v45 = vor.u32 %v1409_v38, %v1267_v39  ;;  %v1274_v46 = vor.u32 %v1414_v42, %v1273_v40  ;;  %v1233_v47 = vld [vmem:[#allocation6 + $0x100] sm:$0xf]  ;;  %v1401_v49 = vld [vmem:[#allocation6 + $0x104] sm:$0xf] }
  0x29   : > { %381 = vmatpush.bf16.msra.mxu1 %v1366_v10  ;;  %v1405_v48 = vld [vmem:[#allocation6 + $0x11c] sm:$0xf0]  ;;  %v1278_v50 = vor.u32 %v1410_v43, %v1275_v44  ;;  %v1235_v51 = vld [vmem:[#allocation6 + $0x120] sm:$0xf0]  ;;  %v1241_v52 = vld [vmem:[#allocation6 + $0x108] sm:$0xf] }
  0x2a   : > { %v1406_v53 = vld [vmem:[#allocation6 + $0x124] sm:$0xf0]  ;;  %v1402_v54 = vld [vmem:[#allocation6 + $0x10c] sm:$0xf]  ;;  %v1234_v56 = vor.u32 %v1405_v48, %v1233_v47  ;;  %v1238_v57 = vor.u32 %v1401_v49, %v1235_v51  ;;  %v1201_v59 = vld [vmem:[#allocation6 + $0xc0] sm:$0xf] }
  0x2b   : > { %819 = vmatpush.bf16.msrb.mxu0 %v1306_v33  ;;  %v1243_v55 = vld [vmem:[#allocation6 + $0x128] sm:$0xf0]  ;;  %v1242_v58 = vor.u32 %v1406_v53, %v1241_v52  ;;  %v1397_v60 = vld [vmem:[#allocation6 + $0xdc] sm:$0xf0]  ;;  %v1393_v61 = vld [vmem:[#allocation6 + $0xc4] sm:$0xf] }
  0x2c   : > { %794 = vmatpush.bf16.msra.mxu2 %v1266_v41  ;;  %807 = vmatpush.bf16.msra.mxu3 %v1270_v45  ;;  %v1246_v62 = vor.u32 %v1402_v54, %v1243_v55  ;;  %v1203_v63 = vld [vmem:[#allocation6 + $0xe0] sm:$0xf0]  ;;  %v1209_v0 = vld [vmem:[#allocation6 + $0xc8] sm:$0xf]  ;;  %v1394_v2 = vld [vmem:[#allocation6 + $0xcc] sm:$0xf]  ;;  %v1202_v4 = vor.u32 %v1397_v60, %v1201_v59 }
  0x2d   : > { %382 = vmatpush.bf16.msra.mxu1 %v1365_v11  ;;  %v1398_v1 = vld [vmem:[#allocation6 + $0xe4] sm:$0xf0]  ;;  %v1211_v3 = vld [vmem:[#allocation6 + $0xe8] sm:$0xf0]  ;;  %v1206_v5 = vor.u32 %v1393_v61, %v1203_v63  ;;  %v1169_v7 = vld [vmem:[#allocation6 + $0x80] sm:$0xf] }
  0x2e   : > { %v1210_v6 = vor.u32 %v1398_v1, %v1209_v0  ;;  %v1389_v8 = vld [vmem:[#allocation6 + $0x9c] sm:$0xf0]  ;;  %v1385_v9 = vld [vmem:[#allocation6 + $0x84] sm:$0xf]  ;;  %v1214_v10 = vor.u32 %v1394_v2, %v1211_v3  ;;  %v1177_v12 = vld [vmem:[#allocation6 + $0x88] sm:$0xf] }
  0x2f   : > { %820 = vmatpush.bf16.msrb.mxu0 %v1274_v46  ;;  %v1171_v11 = vld [vmem:[#allocation6 + $0xa0] sm:$0xf0]  ;;  %v1390_v13 = vld [vmem:[#allocation6 + $0xa4] sm:$0xf0]  ;;  %v1386_v14 = vld [vmem:[#allocation6 + $0x8c] sm:$0xf]  ;;  %v1170_v17 = vor.u32 %v1389_v8, %v1169_v7 }
  0x30   : > { %795 = vmatpush.bf16.msra.mxu2 %v1234_v56  ;;  %808 = vmatpush.bf16.msra.mxu3 %v1238_v57  ;;  %v1179_v15 = vld [vmem:[#allocation6 + $0xa8] sm:$0xf0]  ;;  %v1475_v16 = vld [vmem:[%s1724_s2] ss:$0 sm:$0xff]  ;;  %v1174_v18 = vor.u32 %v1385_v9, %v1171_v11  ;;  %v1178_v19 = vor.u32 %v1390_v13, %v1177_v12  ;;  %v1137_v20 = vld [vmem:[#allocation6 + $0x40] sm:$0xf] }
  0x31   : > { %831 = vmatpush.bf16.msrb.mxu1 %v1342_v24  ;;  %v1381_v21 = vld [vmem:[#allocation6 + $0x5c] sm:$0xf0]  ;;  %v1377_v22 = vld [vmem:[#allocation6 + $0x44] sm:$0xf]  ;;  %v1182_v23 = vor.u32 %v1386_v14, %v1179_v15  ;;  %v1145_v25 = vld [vmem:[#allocation6 + $0x48] sm:$0xf] }
  0x32   : > { %v1139_v24 = vld [vmem:[#allocation6 + $0x60] sm:$0xf0]  ;;  %v1382_v26 = vld [vmem:[#allocation6 + $0x64] sm:$0xf0]  ;;  %v1378_v27 = vld [vmem:[#allocation6 + $0x4c] sm:$0xf]  ;;  %v1138_v29 = vor.u32 %v1381_v21, %v1137_v20 }
  0x33   : > { %821 = vmatpush.bf16.msrb.mxu0 %v1242_v58  ;;  %v1147_v28 = vld [vmem:[#allocation6 + $0x68] sm:$0xf0]  ;;  %v1105_v30 = vld [vmem:[#allocation6] sm:$0xf]  ;;  %v1369_v32 = vld [vmem:[#allocation6 + $0x4] sm:$0xf]  ;;  %v1142_v34 = vor.u32 %v1377_v22, %v1139_v24  ;;  %v1146_v35 = vor.u32 %v1382_v26, %v1145_v25 }
  0x34   : > { %796 = vmatpush.bf16.msra.mxu2 %v1202_v4  ;;  %809 = vmatpush.bf16.msra.mxu3 %v1206_v5  ;;  %v1373_v31 = vld [vmem:[#allocation6 + $0x1c] sm:$0xf0]  ;;  %v1107_v36 = vld [vmem:[#allocation6 + $0x20] sm:$0xf0]  ;;  %v1374_v38 = vld [vmem:[#allocation6 + $0x24] sm:$0xf0]  ;;  %v1150_v40 = vor.u32 %v1378_v27, %v1147_v28 }
  0x35   : > { %832 = vmatpush.bf16.msrb.mxu1 %v1310_v37  ;;  %v1113_v37 = vld [vmem:[#allocation6 + $0x8] sm:$0xf]  ;;  %v1370_v41 = vld [vmem:[#allocation6 + $0xc] sm:$0xf]  ;;  %v1345_v43 = vld [vmem:[#allocation6 + $0x1d0] sm:$0xf]  ;;  %v1106_v48 = vor.u32 %v1373_v31, %v1105_v30  ;;  %v1110_v51 = vor.u32 %v1369_v32, %v1107_v36 }
  0x36   : > { %v1115_v42 = vld [vmem:[#allocation6 + $0x28] sm:$0xf0]  ;;  %v1431_v44 = vld [vmem:[#allocation6 + $0x1ec] sm:$0xf0]  ;;  %v1427_v45 = vld [vmem:[#allocation6 + $0x1d4] sm:$0xf]  ;;  %v1114_v52 = vor.u32 %v1374_v38, %v1113_v37 }
  0x37   : > { %822 = vmatpush.bf16.msrb.mxu0 %v1210_v6  ;;  %v1347_v46 = vld [vmem:[#allocation6 + $0x1f0] sm:$0xf0]  ;;  %v1353_v49 = vld [vmem:[#allocation6 + $0x1d8] sm:$0xf]  ;;  %v1428_v53 = vld [vmem:[#allocation6 + $0x1dc] sm:$0xf]  ;;  %v1118_v56 = vor.u32 %v1370_v41, %v1115_v42  ;;  %v1346_v57 = vor.u32 %v1431_v44, %v1345_v43 }
  0x38   : > { %797 = vmatpush.bf16.msra.mxu2 %v1170_v17  ;;  %810 = vmatpush.bf16.msra.mxu3 %v1174_v18  ;;  %v1355_v54 = vld [vmem:[#allocation6 + $0x1f8] sm:$0xf0]  ;;  %v1350_v58 = vor.u32 %v1427_v45, %v1347_v46  ;;  %v1313_v60 = vld [vmem:[#allocation6 + $0x190] sm:$0xf]  ;;  %v1315_v0 = vld [vmem:[#allocation6 + $0x1b0] sm:$0xf0] }
  0x39   : > { %833 = vmatpush.bf16.msrb.mxu1 %v1278_v50  ;;  %v1432_v50 = vld [vmem:[#allocation6 + $0x1f4] sm:$0xf0]  ;;  %v1423_v61 = vld [vmem:[#allocation6 + $0x1ac] sm:$0xf0]  ;;  %v1358_v63 = vor.u32 %v1428_v53, %v1355_v54  ;;  %v1420_v4 = vld [vmem:[#allocation6 + $0x19c] sm:$0xf] }
  0x3a   : > { %v1354_v59 = vor.u32 %v1432_v50, %v1353_v49  ;;  %v1321_v1 = vld [vmem:[#allocation6 + $0x198] sm:$0xf]  ;;  %v1323_v5 = vld [vmem:[#allocation6 + $0x1b8] sm:$0xf0]  ;;  %v1314_v6 = vor.u32 %v1423_v61, %v1313_v60  ;;  %v1415_v11 = vld [vmem:[#allocation6 + $0x16c] sm:$0xf0] }
  0x3b   : > { %823 = vmatpush.bf16.msrb.mxu0 %v1178_v19  ;;  %v1424_v2 = vld [vmem:[#allocation6 + $0x1b4] sm:$0xf0]  ;;  %v1326_v9 = vor.u32 %v1420_v4, %v1323_v5  ;;  %v1411_v12 = vld [vmem:[#allocation6 + $0x154] sm:$0xf]  ;;  %v1412_v19 = vld [vmem:[#allocation6 + $0x15c] sm:$0xf] }
  0x3c   : > { %798 = vmatpush.bf16.msra.mxu2 %v1138_v29  ;;  %811 = vmatpush.bf16.msra.mxu3 %v1142_v34  ;;  %v1322_v8 = vor.u32 %v1424_v2, %v1321_v1  ;;  %v1283_v14 = vld [vmem:[#allocation6 + $0x170] sm:$0xf0]  ;;  %v1289_v15 = vld [vmem:[#allocation6 + $0x158] sm:$0xf]  ;;  %v1291_v20 = vld [vmem:[#allocation6 + $0x178] sm:$0xf0] }
  0x3d   : > { %834 = vmatpush.bf16.msrb.mxu1 %v1246_v62  ;;  %v1419_v62 = vld [vmem:[#allocation6 + $0x194] sm:$0xf]  ;;  %v1286_v17 = vor.u32 %v1411_v12, %v1283_v14  ;;  %v1294_v21 = vor.u32 %v1412_v19, %v1291_v20  ;;  %v1249_v22 = vld [vmem:[#allocation6 + $0x110] sm:$0xf]  ;;  %v1257_v27 = vld [vmem:[#allocation6 + $0x118] sm:$0xf] }
  0x3e   : > { %v1318_v7 = vor.u32 %v1419_v62, %v1315_v0  ;;  %v1403_v24 = vld [vmem:[#allocation6 + $0x114] sm:$0xf]  ;;  %v1408_v28 = vld [vmem:[#allocation6 + $0x134] sm:$0xf0]  ;;  %v1404_v31 = vld [vmem:[#allocation6 + $0x11c] sm:$0xf] }
  0x3f   : > { %824 = vmatpush.bf16.msrb.mxu0 %v1146_v35  ;;  %v1251_v26 = vld [vmem:[#allocation6 + $0x130] sm:$0xf0]  ;;  %v1258_v30 = vor.u32 %v1408_v28, %v1257_v27  ;;  %v1259_v32 = vld [vmem:[#allocation6 + $0x138] sm:$0xf0]  ;;  %v1217_v34 = vld [vmem:[#allocation6 + $0xd0] sm:$0xf] }
  0x40   : > { %799 = vmatpush.bf16.msra.mxu2 %v1106_v48  ;;  %812 = vmatpush.bf16.msra.mxu3 %v1110_v51  ;;  %v1254_v29 = vor.u32 %v1403_v24, %v1251_v26  ;;  %v1399_v35 = vld [vmem:[#allocation6 + $0xec] sm:$0xf0]  ;;  %v1395_v36 = vld [vmem:[#allocation6 + $0xd4] sm:$0xf]  ;;  %v1396_v43 = vld [vmem:[#allocation6 + $0xdc] sm:$0xf] }
  0x41   : > { %835 = vmatpush.bf16.msrb.mxu1 %v1214_v10  ;;  %v1281_v10 = vld [vmem:[#allocation6 + $0x150] sm:$0xf]  ;;  %v1218_v37 = vor.u32 %v1399_v35, %v1217_v34  ;;  %v1219_v38 = vld [vmem:[#allocation6 + $0xf0] sm:$0xf0]  ;;  %v1227_v44 = vld [vmem:[#allocation6 + $0xf8] sm:$0xf0] }
  0x42   : > { %v1282_v13 = vor.u32 %v1415_v11, %v1281_v10  ;;  %v1222_v41 = vor.u32 %v1395_v36, %v1219_v38  ;;  %v1185_v45 = vld [vmem:[#allocation6 + $0x90] sm:$0xf]  ;;  %v1230_v46 = vor.u32 %v1396_v43, %v1227_v44  ;;  %v1387_v48 = vld [vmem:[#allocation6 + $0x94] sm:$0xf]  ;;  %v1392_v53 = vld [vmem:[#allocation6 + $0xb4] sm:$0xf0] }
  0x43   : > { %825 = vmatpush.bf16.msrb.mxu0 %v1114_v52  ;;  %v1187_v49 = vld [vmem:[#allocation6 + $0xb0] sm:$0xf0]  ;;  %v1193_v52 = vld [vmem:[#allocation6 + $0x98] sm:$0xf]  ;;  %v1388_v54 = vld [vmem:[#allocation6 + $0x9c] sm:$0xf] }
  0x44   : > { %844 = vmatpush.bf16.msrb.mxu2 %v1346_v57  ;;  %857 = vmatpush.bf16.msrb.mxu3 %v1350_v58  ;;  %v1190_v51 = vor.u32 %v1387_v48, %v1187_v49  ;;  %v1153_v57 = vld [vmem:[#allocation6 + $0x50] sm:$0xf]  ;;  %v1379_v60 = vld [vmem:[#allocation6 + $0x54] sm:$0xf]  ;;  %v1161_v62 = vld [vmem:[#allocation6 + $0x58] sm:$0xf] }
  0x45   : > { %836 = vmatpush.bf16.msrb.mxu1 %v1182_v23  ;;  %v1407_v23 = vld [vmem:[#allocation6 + $0x12c] sm:$0xf0]  ;;  %v1155_v61 = vld [vmem:[#allocation6 + $0x70] sm:$0xf0]  ;;  %v1384_v0 = vld [vmem:[#allocation6 + $0x74] sm:$0xf0] }
  0x46   : > { %v1250_v25 = vor.u32 %v1407_v23, %v1249_v22  ;;  %v1383_v58 = vld [vmem:[#allocation6 + $0x6c] sm:$0xf0]  ;;  %v1380_v1 = vld [vmem:[#allocation6 + $0x5c] sm:$0xf]  ;;  %v1162_v4 = vor.u32 %v1384_v0, %v1161_v62  ;;  %v1129_v10 = vld [vmem:[#allocation6 + $0x18] sm:$0xf] }
  0x47   : > { %870 = vmatpush.bf16.msra.mxu0 %v1354_v59  ;;  %v1163_v2 = vld [vmem:[#allocation6 + $0x78] sm:$0xf0]  ;;  %v1121_v5 = vld [vmem:[#allocation6 + $0x10] sm:$0xf]  ;;  %v1376_v11 = vld [vmem:[#allocation6 + $0x34] sm:$0xf0] }
  0x48   : > { %845 = vmatpush.bf16.msrb.mxu2 %v1314_v6  ;;  %858 = vmatpush.bf16.msrb.mxu3 %v1318_v7  ;;  %v1375_v6 = vld [vmem:[#allocation6 + $0x2c] sm:$0xf0]  ;;  %v1371_v7 = vld [vmem:[#allocation6 + $0x14] sm:$0xf]  ;;  %v1372_v12 = vld [vmem:[#allocation6 + $0x1c] sm:$0xf] }
  0x49   : > { %837 = vmatpush.bf16.msrb.mxu1 %v1150_v40  ;;  %v1400_v40 = vld [vmem:[#allocation6 + $0xf4] sm:$0xf0]  ;;  %v1122_v14 = vor.u32 %v1375_v6, %v1121_v5  ;;  %s1359_s10 = sshll.u32 %s1643_s28, 3  ;;  %vm985_vm5 = vcmask 1042434   ;;  %vm990_vm6 = vcmask 1046534   ;;  %vm988_vm7 = vcmask 1044484  }
  0x4a   : > { %v454_v24 = vld [vmem:[%s1728_s6] sm:$0xff]  ;;  %vm992_vm8 = vcmask 1045508   ;;  %vm994_vm9 = vcmask 1043456   ;;  %p1360_p8 = scmp.ne.s32.totalorder %s1643_s28, 2 }
  0x4b   : > { %871 = vmatpush.bf16.msra.mxu0 %v1322_v8  ;;  %v1166_v8 = vor.u32 %v1380_v1, %v1163_v2  ;;  %v458_v26 = vperm.slane %v454_v24, 2  ;;  %v459_v28 = vperm.slane %v454_v24, 3  ;;  %v456_v35 = vperm.slane %v454_v24, 0 }
  0x4c   : > { %846 = vmatpush.bf16.msrb.mxu2 %v1282_v13  ;;  %859 = vmatpush.bf16.msrb.mxu3 %v1286_v17  ;;  %v1131_v13 = vld [vmem:[#allocation6 + $0x38] sm:$0xf0]  ;;  %v457_v36 = vperm.slane %v454_v24, 1  ;;  %v460_v2 = vperm.slane %v454_v24, 4 }
  0x4d   : > { %838 = vmatpush.bf16.msrb.mxu1 %v1118_v56  ;;  %v1195_v56 = vld [vmem:[#allocation6 + $0xb8] sm:$0xf0]  ;;  %v1134_v17 = vor.u32 %v1372_v12, %v1131_v13 }
  0x4e   : > { %v1198_v59 = vor.u32 %v1388_v54, %v1195_v56  ;;  %v463_v56 = vperm.slane %v454_v24, 7 }
  0x50   : > { %847 = vmatpush.bf16.msrb.mxu2 %v1250_v25  ;;  %860 = vmatpush.bf16.msrb.mxu3 %v1254_v29  ;;  %v905_v25 = vlaneseq  ;;  %v907_v29 = vstv %s1359_s10 }
  0x52   : > { %v906_v27 = vshrl.u32 %v905_v25, 7 }
  0x54   : > { %848 = vmatpush.bf16.msrb.mxu2 %v1218_v37  ;;  %861 = vmatpush.bf16.msrb.mxu3 %v1222_v41 }
  0x58   : > { %862 = vmatpush.bf16.msrb.mxu3 %v1190_v51 }
  0xa3   : > { %v329_v33 = vpop.f32.mrf.mxu0 }
  0xa4   : > { %v330_v39 = vadd.f32 %v1475_v16, %v329_v33  ;;  %v1416_v16 = vld [vmem:[#allocation6 + $0x174] sm:$0xf0]  ;;  %v1262_v33 = vor.u32 %v1404_v31, %v1259_v32 }
  0xa5   : > { %v1290_v18 = vor.u32 %v1416_v16, %v1289_v15  ;;  %v1130_v16 = vor.u32 %v1376_v11, %v1129_v10 }
  0xa6   : > { %v333_v47 = vmax.f32 %v330_v39, 0.0  ;;  %v1225_v39 = vld [vmem:[#allocation6 + $0xd8] sm:$0xf] }
  0xa7   : > { %872 = vmatpush.bf16.msra.mxu0 %v1290_v18  ;;  %v1226_v42 = vor.u32 %v1400_v40, %v1225_v39  ;;  %v1476_v18 = vld [vmem:[%s1726_s4] ss:$0 sm:$0xff] }
  0xa8   : > { %v342_v55 = vpack.c.bf16 %v333_v47, %v333_v47  ;;  %v1391_v47 = vld [vmem:[#allocation6 + $0xac] sm:$0xf0] }
  0xa9   : > { %v1186_v50 = vor.u32 %v1391_v47, %v1185_v45 }
  0xaa   : > { %1102 = vmatmul.msk.bf16.vlgmr.msra.gmra.mxu1 %vm371_vm3, %v342_v55  ;;  %v1194_v55 = vor.u32 %v1392_v53, %v1193_v52 }
  0xab   : > { %v331_v3 = vpop.f32.mrf.mxu0  ;;  %883 = vmatpush.bf16.msra.mxu1 %v1358_v63  ;;  %873 = vmatpush.bf16.msra.mxu0 %v1258_v30  ;;  %v1154_v63 = vor.u32 %v1383_v58, %v1153_v57 }
  0xac   : > { %849 = vmatpush.bf16.msrb.mxu2 %v1186_v50  ;;  %v1158_v3 = vor.u32 %v1379_v60, %v1155_v61 }
  0xae   : > { %863 = vmatpush.bf16.msrb.mxu3 %v1158_v3  ;;  %v461_v3 = vperm.slane %v454_v24, 5 }
  0xaf   : > { %884 = vmatpush.bf16.msra.mxu1 %v1326_v9  ;;  %874 = vmatpush.bf16.msra.mxu0 %v1226_v42  ;;  %v1123_v9 = vld [vmem:[#allocation6 + $0x30] sm:$0xf0] }
  0xb0   : > { %850 = vmatpush.bf16.msrb.mxu2 %v1154_v63  ;;  %v1126_v15 = vor.u32 %v1371_v7, %v1123_v9 }
  0xb2   : > { %864 = vmatpush.bf16.msrb.mxu3 %v1126_v15 }
  0xb3   : > { %885 = vmatpush.bf16.msra.mxu1 %v1294_v21  ;;  %875 = vmatpush.bf16.msra.mxu0 %v1194_v55  ;;  %v462_v55 = vperm.slane %v454_v24, 6 }
  0xb4   : > { %851 = vmatpush.bf16.msrb.mxu2 %v1122_v14 }
  0xb7   : > { %886 = vmatpush.bf16.msra.mxu1 %v1262_v33  ;;  %876 = vmatpush.bf16.msra.mxu0 %v1162_v4  ;;  %v1693_v33 = vadd.s32 %v907_v29, %v906_v27 }
  0xb9   : > { %vm909_vm4 = vcmp.lt.s32.totalorder %v1693_v33, 20 }
  0xbb   : > { %887 = vmatpush.bf16.msra.mxu1 %v1230_v46  ;;  %877 = vmatpush.bf16.msra.mxu0 %v1130_v16 }
  0xbf   : > { %888 = vmatpush.bf16.msra.mxu1 %v1198_v59 }
  0xc3   : > { %889 = vmatpush.bf16.msra.mxu1 %v1166_v8 }
  0xc7   : > { %890 = vmatpush.bf16.msra.mxu1 %v1134_v17 }
 0x127   : > { %v384_v19 = vpop.f32.mrf.mxu1 }
 0x128   : > { %v385_v20 = vadd.f32 %v1476_v18, %v384_v19 }
 0x12a   : > { %v388_v21 = vmax.f32 %v385_v20, 0.0 }
 0x12c   : > { %v453_v22 = vpack.c.bf16 %v388_v21, %v388_v21 }
 0x12e   : > { %800 = vmatmul.bf16.vlgmr.msra.gmra.mxu2 %v453_v22  ;;  %813 = vmatmul.bf16.vlgmr.msra.gmra.mxu3 %v453_v22 }
 0x12f   : > { %826 = vmatmul.bf16.vlgmr.msrb.gmra.mxu0 %v453_v22  ;;  %839 = vmatmul.bf16.vlgmr.msrb.gmra.mxu1 %v453_v22  ;;  %v386_v23 = vpop.f32.mrf.mxu1 }
 0x13e   : > { %852 = vmatmul.bf16.vlgmr.msrb.gmra.mxu2 %v453_v22  ;;  %865 = vmatmul.bf16.vlgmr.msrb.gmra.mxu3 %v453_v22 }
 0x13f   : > { %878 = vmatmul.bf16.vlgmr.msra.gmra.mxu0 %v453_v22  ;;  %891 = vmatmul.bf16.vlgmr.msra.gmra.mxu1 %v453_v22 }
 0x1ac   : > { %v827_v30 = vpop.f32.mrf.mxu0  ;;  %v840_v31 = vpop.f32.mrf.mxu1 }
 0x1ad   : > { %v828_v32 = vadd.f32 %v827_v30, %v458_v26  ;;  %v841_v34 = vadd.f32 %v840_v31, %v459_v28 }
 0x1af   : > { %v898_v37 = vmax.f32 %v828_v32, 0.0  ;;  %v899_v40 = vmax.f32 %v841_v34, 0.0 }
 0x1b1   : > { %v801_v38 = vpop.f32.mrf.mxu2  ;;  %v814_v39 = vpop.f32.mrf.mxu3  ;;  %v914_v46 = vsel %vm909_vm4, %v898_v37, 0.0  ;;  %v915_v47 = vsel %vm909_vm4, %v899_v40, 0.0 }
 0x1b2   : > { %v802_v41 = vadd.f32 %v801_v38, %v456_v35  ;;  %v815_v42 = vadd.f32 %v814_v39, %v457_v36  ;;  %v933_v51 = vrot.slane %v914_v46, 4  ;;  %v939_v52 = vrot.slane %v915_v47, 4 }
 0x1b4   : > { %v897_v43 = vmax.f32 %v815_v42, 0.0  ;;  %v829_v44 = vpop.f32.mrf.mxu0  ;;  %v842_v45 = vpop.f32.mrf.mxu1  ;;  %v896_v48 = vmax.f32 %v802_v41, 0.0  ;;  %v934_v59 = vmax.f32 %v914_v46, %v933_v51  ;;  %v940_v62 = vmax.f32 %v915_v47, %v939_v52 }
 0x1b6   : > { %v913_v49 = vsel %vm909_vm4, %v897_v43, 0.0  ;;  %v912_v57 = vsel %vm909_vm4, %v896_v48, 0.0  ;;  %v935_v7 = vrot.slane %v934_v59, 2  ;;  %v941_v8 = vrot.slane %v940_v62, 2 }
 0x1b7   : > { %v927_v50 = vrot.slane %v913_v49, 4  ;;  %v921_v63 = vrot.slane %v912_v57, 4 }
 0x1b8   : > { %v936_v25 = vmax.f32 %v934_v59, %v935_v7  ;;  %v942_v26 = vmax.f32 %v940_v62, %v941_v8  ;;  %v920_v7 = vld [vmem:[#allocation2] sm:$0xff] }
 0x1b9   : > { %v803_v53 = vpop.f32.mrf.mxu2  ;;  %v816_v54 = vpop.f32.mrf.mxu3  ;;  %v928_v58 = vmax.f32 %v913_v49, %v927_v50  ;;  %v922_v9 = vmax.f32 %v912_v57, %v921_v63 }
 0x1ba   : > { %v937_v38 = vrot.slane %v936_v25, 1  ;;  %v943_v39 = vrot.slane %v942_v26, 1 }
 0x1bb   : > { %v929_v4 = vrot.slane %v928_v58, 2  ;;  %v923_v27 = vrot.slane %v922_v9, 2 }
 0x1bc   : > { %v879_v60 = vpop.f32.mrf.mxu0  ;;  %v892_v61 = vpop.f32.mrf.mxu1  ;;  %v938_v50 = vmax.f32 %v936_v25, %v937_v38  ;;  %v944_v51 = vmax.f32 %v942_v26, %v943_v39 }
 0x1bd   : > { %v880_v0 = vadd.f32 %v879_v60, %v462_v55  ;;  %v893_v1 = vadd.f32 %v892_v61, %v463_v56  ;;  %v930_v18 = vmax.f32 %v928_v58, %v929_v4  ;;  %v924_v43 = vmax.f32 %v922_v9, %v923_v27 }
 0x1be   : > { %v978_v59 = vrot.slane %v938_v50, 6  ;;  %v979_v60 = vrot.slane %v944_v51, 5 }
 0x1bf   : > { %v902_v5 = vmax.f32 %v880_v0, 0.0  ;;  %v903_v6 = vmax.f32 %v893_v1, 0.0  ;;  %v931_v34 = vrot.slane %v930_v18, 1  ;;  %v925_v52 = vrot.slane %v924_v43, 1 }
 0x1c1   : > { %v918_v10 = vsel %vm909_vm4, %v902_v5, 0.0  ;;  %v919_v11 = vsel %vm909_vm4, %v903_v6, 0.0  ;;  %v853_v12 = vpop.f32.mrf.mxu2  ;;  %v866_v13 = vpop.f32.mrf.mxu3  ;;  %v932_v48 = vmax.f32 %v930_v18, %v931_v34  ;;  %v926_v62 = vmax.f32 %v924_v43, %v925_v52 }
 0x1c2   : > { %v957_v14 = vrot.slane %v918_v10, 4  ;;  %v963_v15 = vrot.slane %v919_v11, 4  ;;  %v854_v16 = vadd.f32 %v853_v12, %v460_v2  ;;  %v867_v17 = vadd.f32 %v866_v13, %v461_v3 }
 0x1c3   : > { %v977_v57 = vrot.slane %v932_v48, 7  ;;  %v986_v5 = vsel %vm985_vm5, %v978_v59, %v979_v60 }
 0x1c4   : > { %v958_v19 = vmax.f32 %v918_v10, %v957_v14  ;;  %v964_v20 = vmax.f32 %v919_v11, %v963_v15  ;;  %v900_v21 = vmax.f32 %v854_v16, 0.0  ;;  %v901_v22 = vmax.f32 %v867_v17, 0.0  ;;  %v881_v23 = vpop.f32.mrf.mxu0  ;;  %v894_v24 = vpop.f32.mrf.mxu1 }
 0x1c5   : > { %v984_v3 = vsel %vm313_vm0, %v926_v62, %v977_v57 }
 0x1c6   : > { %v959_v28 = vrot.slane %v958_v19, 2  ;;  %v965_v29 = vrot.slane %v964_v20, 2  ;;  %v916_v30 = vsel %vm909_vm4, %v900_v21, 0.0  ;;  %v917_v32 = vsel %vm909_vm4, %v901_v22, 0.0 }
 0x1c7   : > { %v945_v31 = vrot.slane %v916_v30, 4  ;;  %v951_v37 = vrot.slane %v917_v32, 4  ;;  %v987_v9 = vsel %vm314_vm1, %v984_v3, %v986_v5 }
 0x1c8   : > { %v960_v35 = vmax.f32 %v958_v19, %v959_v28  ;;  %v966_v36 = vmax.f32 %v964_v20, %v965_v29 }
 0x1c9   : > { %v946_v40 = vmax.f32 %v916_v30, %v945_v31  ;;  %v855_v41 = vpop.f32.mrf.mxu2  ;;  %v868_v42 = vpop.f32.mrf.mxu3  ;;  %v952_v46 = vmax.f32 %v917_v32, %v951_v37 }
 0x1ca   : > { %v961_v44 = vrot.slane %v960_v35, 1  ;;  %v967_v45 = vrot.slane %v966_v36, 1 }
 0x1cb   : > { %v947_v47 = vrot.slane %v946_v40, 2  ;;  %v953_v49 = vrot.slane %v952_v46, 2 }
 0x1cc   : > { %v962_v53 = vmax.f32 %v960_v35, %v961_v44  ;;  %v968_v54 = vmax.f32 %v966_v36, %v967_v45 }
 0x1cd   : > { %v948_v33 = vmax.f32 %v946_v40, %v947_v47  ;;  %v954_v55 = vmax.f32 %v952_v46, %v953_v49 }
 0x1ce   : > { %v982_v63 = vrot.slane %v962_v53, 2  ;;  %v983_v0 = vrot.slane %v968_v54, 1 }
 0x1cf   : > { %v949_v56 = vrot.slane %v948_v33, 1  ;;  %v955_v58 = vrot.slane %v954_v55, 1 }
 0x1d0   : > { %v991_v6 = vsel %vm990_vm6, %v982_v63, %v983_v0 }
 0x1d1   : > { %v950_v61 = vmax.f32 %v948_v33, %v949_v56  ;;  %v956_v1 = vmax.f32 %v954_v55, %v955_v58 }
 0x1d3   : > { %v980_v2 = vrot.slane %v950_v61, 4  ;;  %v981_v4 = vrot.slane %v956_v1, 3 }
 0x1d5   : > { %v989_v8 = vsel %vm988_vm7, %v980_v2, %v981_v4 }
 0x1d6   : > { %v993_v10 = vsel %vm992_vm8, %v989_v8, %v991_v6  ;;  %1002 = sbr.rel (%p1360_p8) target bundleno = 483 (0x1e3), region = 64 }
 0x1d7   : > { %v995_v11 = vsel %vm994_vm9, %v987_v9, %v993_v10 }
 0x1d8   : > { %v997_v12 = vmax.f32 %v920_v7, %v995_v11 }
 0x1da   : > { %998 = vst [vmem:[#allocation2] sm:$0xff] %v997_v12 }
 0x1e1   : > { %v1003_v13 = vld [vmem:[#allocation2] sm:$0xff] }
 0x1e2   : > { %1004 = vst [vmem:[#allocation8] sm:$0xff] %v1003_v13 }
 0x1e3 PF: > { %p1456_p9 = scmp.eq.s32.totalorder %s1643_s28, 2  ;;  %s1593_s11 = smov [#allocation8]  }
 0x1e4   : > { %s1011_s12 = sshll.u32 %s1593_s11, 4  ;;  %s1013_s15 = sshll.u32 %s1729_s7, 4  ;;  %s1012_s12 = int_to_ptr.vmem [resolvable:$true] %s1011_s12  ;;  %s1014_s15 = int_to_ptr.hbm [resolvable:$true] %s1013_s15 }
 0x1e5   : > { %1442 = dma.vmem_to_hbm [thread:$0]  (%p1456_p9), %s1012_s12, 128, %s1014_s15, [#allocation5]  }
 0x1e6   : > { %1578 = dma.done.wait (%p1456_p9), [#allocation5], 128  }
 0x1e7   : > { %1580 = vsyncadd (%p1456_p9), [#allocation5], 4294967168 }
 0x1e8 PF: > { %s20_s24 = sadd.s32 1, %s1583_s24  }
 0x1e9   : > { %p17_p10 = scmp.ge.s32.totalorder %s20_s24, 5  }
 0x1eb   :  { %19 = sbr.rel (!%p17_p10) target bundleno = 3 (0x3), region = 92 }
 0x1f0   :  { %1027 = vsyncpa [#allocation4], 1 }
 0x1f1   :  { %1029 = vsyncpa [#allocation4 + $0x1], 1 }
 0x1f2   :  { %1030 = vsyncpa [#allocation7], 1 }
 0x1f3   :  { %1031 = vsyncpa [#allocation5], 1 }
 0x1f4   :  { %1033 = vsyncpa [#allocation5 + $0x1], 1 }

</bundles_post_ra>
